<compile_context>
chip_gen: v5e
topology: v5e:2x2
jax: 0.10.0
libtpu: 0.0.40
codegen_flags: <defaults>
</compile_context>

<pallas_src>
import functools
import math

import numpy as np
import jax
import jax.numpy as jnp
from jax.experimental import pallas as pl
from jax.experimental.pallas import tpu as pltpu


# ---------------------------------------------------------------------------
# PyTorch pooling arithmetic
# ---------------------------------------------------------------------------

def _level_params(h, w, level):
    """Replicates F.max_pool2d / F.avg_pool2d kernel/stride/padding/out-size."""
    kh, kw = math.ceil(h / level), math.ceil(w / level)
    sh, sw = kh, kw
    ph = math.floor((kh * level - h + 1) / 2)
    pw = math.floor((kw * level - w + 1) / 2)
    oh = (h + 2 * ph - kh) // sh + 1
    ow = (w + 2 * pw - kw) // sw + 1
    return kh, kw, sh, sw, ph, pw, oh, ow


def _round_up(v, m):
    return ((v + m - 1) // m) * m


# ---------------------------------------------------------------------------
# Generation-aware tiling
# ---------------------------------------------------------------------------

def _tpu_limits():
    """(vmem_capacity_bytes, num_tensorcores) with conservative fallbacks."""
    vmem = 64 << 20   # conservative default (v7x has 64 MiB / core)
    cores = 1
    try:
        info = pltpu.get_tpu_info()
        vmem = int(getattr(info, "vmem_capacity_bytes", vmem))
        for name in ("num_cores", "core_count", "num_tensorcores", "tensorcore_count"):
            v = getattr(info, name, None)
            if isinstance(v, int) and v > 0:
                cores = v
                break
    except Exception:
        pass
    return vmem, cores


def _pick_row_tile(rows, row_vmem_bytes, vmem_limit, cores, resident_bytes=0):
    """Rows (of N*C) per block: biggest tile fitting a double-buffered budget."""
    avail = vmem_limit - 2 * resident_bytes - (4 << 20)       # headroom for out/internal
    budget = max(512 << 10, min(24 << 20, avail // 2))        # one of 2 pipelined in-bufs
    tm = max(1, budget // max(1, row_vmem_bytes))
    tm = min(tm, rows)
    if cores >= 2 and rows >= 16:                             # only split for multi-TC chips
        tm = min(tm, max(8, pl.cdiv(rows, cores)))
    if tm >= rows:
        return rows                                           # full extent: always legal
    if rows < 8:
        return rows
    return max(8, (tm // 8) * 8)                              # sublane-aligned partial blocks


# ---------------------------------------------------------------------------
# Kernels
# ---------------------------------------------------------------------------

def _spp_max_kernel(x_ref, o_ref, *, H, W, params):
    """Max pooling on NCHW rows.

    x_ref: (TM, H, W)   o_ref: (TM, P_total)   (TM rows of the N*C axis)
    Non-overlapping windows -> separable reduction:
      * H-phase: elementwise VPU maxima of whole rows, ref-sliced per use.
      * W-phase: masked cross-lane max per window (XLU; idle otherwise).
    -inf padding of max_pool2d == simply ignoring the clipped region.
    """
    lane = jax.lax.broadcasted_iota(jnp.int32, (1, W), 1)          # hoisted once
    if jnp.issubdtype(x_ref.dtype, jnp.floating):
        neg = jnp.array(-jnp.inf, dtype=x_ref.dtype)
    else:
        neg = jnp.array(jnp.iinfo(x_ref.dtype).min, dtype=x_ref.dtype)

    off = 0
    for (kh, kw, sh, sw, ph, pw, oh, ow) in params:
        for ih in range(oh):
            hs = max(ih * sh - ph, 0)
            he = min(ih * sh - ph + kh, H)
            row = x_ref[:, hs, :]                                   # (TM, W)
            for h in range(hs + 1, he):
                row = jnp.maximum(row, x_ref[:, h, :])              # VPU
            for iw in range(ow):
                ws = max(iw * sw - pw, 0)
                we = min(iw * sw - pw + kw, W)
                if ws == 0 and we == W:
                    col = jnp.max(row, axis=-1, keepdims=True)      # (TM, 1)
                else:
                    masked = jnp.where((lane >= ws) & (lane < we), row, neg)
                    col = jnp.max(masked, axis=-1, keepdims=True)
                p = off + ih * ow + iw
                o_ref[:, p:p + 1] = col.astype(o_ref.dtype)
        off += oh * ow


def _spp_avg_kernel(at_ref, x_ref, o_ref):
    """Average pooling as a single MXU matmul per block.

    at_ref: (H*W, P_total) static f32 pooling matrix (count_include_pad=True
            divisor 1/(kh*kw) baked in; zero padding contributes 0).
    x_ref : (TM, H*W)  -> batch*channels folded into the MXU M dimension.
    o_ref : (TM, P_total)
    """
    o_ref[...] = jnp.dot(x_ref[...], at_ref[...],
                         preferred_element_type=jnp.float32).astype(o_ref.dtype)


# ---------------------------------------------------------------------------
# Wrapper
# ---------------------------------------------------------------------------

def spp_layer(x, num_levels, pool_type='max_pool'):
    N, C, H, W = x.shape
    params = [_level_params(H, W, i + 1) for i in range(num_levels)]
    for (kh, kw, sh, sw, ph, pw, oh, ow) in params:
        # PyTorch requires padding <= kernel/2; also guarantees no empty windows.
        assert 2 * ph <= kh and 2 * pw <= kw, "padding exceeds half kernel"
        assert oh >= 1 and ow >= 1
    p_total = sum(oh * ow for *_, oh, ow in params)

    R = N * C
    itemsize = jnp.dtype(x.dtype).itemsize
    vmem_bytes, cores = _tpu_limits()
    vmem_limit = max(32 << 20, min(vmem_bytes * 3 // 4, 96 << 20))
    cparams = pltpu.CompilerParams(dimension_semantics=("parallel",),
                                   vmem_limit_bytes=int(vmem_limit))

    if pool_type == 'max_pool':
        x_rows = x.reshape(R, H, W)                 # free: NCHW is already contiguous this way
        # VMEM footprint per row includes (8,128) tile padding of the (H, W) plane.
        row_vmem = _round_up(H, 8) * _round_up(W, 128) * itemsize
        TM = _pick_row_tile(R, row_vmem, vmem_limit, cores)
        grid = (pl.cdiv(R, TM),)
        kernel = functools.partial(_spp_max_kernel, H=H, W=W, params=params)
        y = pl.pallas_call(
            kernel,
            out_shape=jax.ShapeDtypeStruct((R, p_total), x.dtype),
            grid=grid,
            in_specs=[pl.BlockSpec((TM, H, W), lambda m: (m, 0, 0))],
            out_specs=pl.BlockSpec((TM, p_total), lambda m: (m, 0)),
            compiler_params=cparams,
        )(x_rows)
    else:
        x_rows = x.reshape(R, H * W)                # free reshape
        # Static pooling matrix A^T (H*W, P_total), kept in f32 for exactness
        # (mixed-precision matmul when x is bf16; accumulation is f32 either way).
        AT = np.zeros((H * W, p_total), np.float32)
        off = 0
        for (kh, kw, sh, sw, ph, pw, oh, ow) in params:
            inv = 1.0 / float(kh * kw)
            for ih in range(oh):
                hs, he = max(ih * sh - ph, 0), min(ih * sh - ph + kh, H)
                for iw in range(ow):
                    ws, we = max(iw * sw - pw, 0), min(iw * sw - pw + kw, W)
                    p = off + ih * ow + iw
                    for h in range(hs, he):
                        AT[h * W + ws:h * W + we, p] = inv
            off += oh * ow
        AT = jnp.asarray(AT)

        at_bytes = H * W * p_total * 4
        row_vmem = _round_up(H * W, 128) * itemsize
        TM = _pick_row_tile(R, row_vmem, vmem_limit, cores, resident_bytes=at_bytes)
        grid = (pl.cdiv(R, TM),)
        y = pl.pallas_call(
            _spp_avg_kernel,
            out_shape=jax.ShapeDtypeStruct((R, p_total), x.dtype),
            grid=grid,
            in_specs=[pl.BlockSpec((H * W, p_total), lambda m: (0, 0)),
                      pl.BlockSpec((TM, H * W), lambda m: (m, 0))],
            out_specs=pl.BlockSpec((TM, p_total), lambda m: (m, 0)),
            compiler_params=cparams,
        )(AT, x_rows)

    # (N*C, P) -> PyTorch order: per level, channel-major flatten; concat levels.
    y = y.reshape(N, C, p_total)
    parts, off = [], 0
    for (*_, oh, ow) in params:
        p_l = oh * ow
        parts.append(y[:, :, off:off + p_l].reshape(N, C * p_l))
        off += p_l
    return jnp.concatenate(parts, axis=1)


# ---------------------------------------------------------------------------
# Plain-JAX reference (identical semantics) for validation
# ---------------------------------------------------------------------------

def _spp_reference(x, num_levels, pool_type='max_pool'):
    N, C, H, W = x.shape
    outs = []
    for i in range(num_levels):
        kh, kw, sh, sw, ph, pw, oh, ow = _level_params(H, W, i + 1)
        vals = []
        for ih in range(oh):
            for iw in range(ow):
                hs, he = max(ih * sh - ph, 0), min(ih * sh - ph + kh, H)
                ws, we = max(iw * sw - pw, 0), min(iw * sw - pw + kw, W)
                win = x[:, :, hs:he, ws:we]
                if pool_type == 'max_pool':
                    vals.append(jnp.max(win, axis=(2, 3)))
                else:
                    vals.append(jnp.sum(win, axis=(2, 3)) / float(kh * kw))
        pooled = jnp.stack(vals, axis=2)  # (N, C, oh*ow)
        outs.append(pooled.reshape(N, -1))
    return jnp.concatenate(outs, axis=1)


if __name__ == "__main__":
    key = jax.random.PRNGKey(0)
    N, C, H, W = 2, 4, 16, 16
    num_levels = 3
    x = jax.random.normal(key, (N, C, H, W), dtype=jnp.float32)

    for pool_type in ("max_pool", "avg_pool"):
        out = jax.block_until_ready(spp_layer(x, num_levels, pool_type))
        ref = _spp_reference(x, num_levels, pool_type)
        assert out.shape == ref.shape, (pool_type, out.shape, ref.shape)
        assert jnp.allclose(out, ref, atol=1e-5, rtol=1e-5), f"mismatch ({pool_type})"

    print("KERNEL_OK")
</pallas_src>

<mosaic_0001>
module attributes {stable_mosaic.version = 11 : i64} {
  func.func @_spp_max_kernel(%arg0: i32, %arg1: memref<8x16x16xf32, #tpu.memory_space<vmem>>, %arg2: memref<8x14xf32, #tpu.memory_space<vmem>>) attributes {dimension_semantics = [#tpu.dimension_semantics<parallel>], iteration_bounds = array<i64: 1>, scalar_prefetch = 0 : i64, scratch_operands = 0 : i64, tpu.core_type = #tpu.core_type<tc>, window_params = [{transform_indices = @transform_0, window_bounds = array<i64: 8, 16, 16>}, {transform_indices = @transform_1, window_bounds = array<i64: 8, 14>}]} {
    %0 = tpu.iota {dimensions = array<i32: 1>} : vector<1x16xi32>
    %c0 = arith.constant 0 : index
    %c0_0 = arith.constant 0 : index
    %c0_1 = arith.constant 0 : index
    %1 = vector.load %arg1[%c0, %c0_0, %c0_1] : memref<8x16x16xf32, #tpu.memory_space<vmem>>, vector<8x1x16xf32>
    %2 = vector.shape_cast %1 : vector<8x1x16xf32> to vector<8x16xf32>
    %c0_2 = arith.constant 0 : index
    %c1 = arith.constant 1 : index
    %c0_3 = arith.constant 0 : index
    %3 = vector.load %arg1[%c0_2, %c1, %c0_3] : memref<8x16x16xf32, #tpu.memory_space<vmem>>, vector<8x1x16xf32>
    %4 = vector.shape_cast %3 : vector<8x1x16xf32> to vector<8x16xf32>
    %5 = arith.maximumf %2, %4 : vector<8x16xf32>
    %c0_4 = arith.constant 0 : index
    %c2 = arith.constant 2 : index
    %c0_5 = arith.constant 0 : index
    %6 = vector.load %arg1[%c0_4, %c2, %c0_5] : memref<8x16x16xf32, #tpu.memory_space<vmem>>, vector<8x1x16xf32>
    %7 = vector.shape_cast %6 : vector<8x1x16xf32> to vector<8x16xf32>
    %8 = arith.maximumf %5, %7 : vector<8x16xf32>
    %c0_6 = arith.constant 0 : index
    %c3 = arith.constant 3 : index
    %c0_7 = arith.constant 0 : index
    %9 = vector.load %arg1[%c0_6, %c3, %c0_7] : memref<8x16x16xf32, #tpu.memory_space<vmem>>, vector<8x1x16xf32>
    %10 = vector.shape_cast %9 : vector<8x1x16xf32> to vector<8x16xf32>
    %11 = arith.maximumf %8, %10 : vector<8x16xf32>
    %c0_8 = arith.constant 0 : index
    %c4 = arith.constant 4 : index
    %c0_9 = arith.constant 0 : index
    %12 = vector.load %arg1[%c0_8, %c4, %c0_9] : memref<8x16x16xf32, #tpu.memory_space<vmem>>, vector<8x1x16xf32>
    %13 = vector.shape_cast %12 : vector<8x1x16xf32> to vector<8x16xf32>
    %14 = arith.maximumf %11, %13 : vector<8x16xf32>
    %c0_10 = arith.constant 0 : index
    %c5 = arith.constant 5 : index
    %c0_11 = arith.constant 0 : index
    %15 = vector.load %arg1[%c0_10, %c5, %c0_11] : memref<8x16x16xf32, #tpu.memory_space<vmem>>, vector<8x1x16xf32>
    %16 = vector.shape_cast %15 : vector<8x1x16xf32> to vector<8x16xf32>
    %17 = arith.maximumf %14, %16 : vector<8x16xf32>
    %c0_12 = arith.constant 0 : index
    %c6 = arith.constant 6 : index
    %c0_13 = arith.constant 0 : index
    %18 = vector.load %arg1[%c0_12, %c6, %c0_13] : memref<8x16x16xf32, #tpu.memory_space<vmem>>, vector<8x1x16xf32>
    %19 = vector.shape_cast %18 : vector<8x1x16xf32> to vector<8x16xf32>
    %20 = arith.maximumf %17, %19 : vector<8x16xf32>
    %c0_14 = arith.constant 0 : index
    %c7 = arith.constant 7 : index
    %c0_15 = arith.constant 0 : index
    %21 = vector.load %arg1[%c0_14, %c7, %c0_15] : memref<8x16x16xf32, #tpu.memory_space<vmem>>, vector<8x1x16xf32>
    %22 = vector.shape_cast %21 : vector<8x1x16xf32> to vector<8x16xf32>
    %23 = arith.maximumf %20, %22 : vector<8x16xf32>
    %c0_16 = arith.constant 0 : index
    %c8 = arith.constant 8 : index
    %c0_17 = arith.constant 0 : index
    %24 = vector.load %arg1[%c0_16, %c8, %c0_17] : memref<8x16x16xf32, #tpu.memory_space<vmem>>, vector<8x1x16xf32>
    %25 = vector.shape_cast %24 : vector<8x1x16xf32> to vector<8x16xf32>
    %26 = arith.maximumf %23, %25 : vector<8x16xf32>
    %c0_18 = arith.constant 0 : index
    %c9 = arith.constant 9 : index
    %c0_19 = arith.constant 0 : index
    %27 = vector.load %arg1[%c0_18, %c9, %c0_19] : memref<8x16x16xf32, #tpu.memory_space<vmem>>, vector<8x1x16xf32>
    %28 = vector.shape_cast %27 : vector<8x1x16xf32> to vector<8x16xf32>
    %29 = arith.maximumf %26, %28 : vector<8x16xf32>
    %c0_20 = arith.constant 0 : index
    %c10 = arith.constant 10 : index
    %c0_21 = arith.constant 0 : index
    %30 = vector.load %arg1[%c0_20, %c10, %c0_21] : memref<8x16x16xf32, #tpu.memory_space<vmem>>, vector<8x1x16xf32>
    %31 = vector.shape_cast %30 : vector<8x1x16xf32> to vector<8x16xf32>
    %32 = arith.maximumf %29, %31 : vector<8x16xf32>
    %c0_22 = arith.constant 0 : index
    %c11 = arith.constant 11 : index
    %c0_23 = arith.constant 0 : index
    %33 = vector.load %arg1[%c0_22, %c11, %c0_23] : memref<8x16x16xf32, #tpu.memory_space<vmem>>, vector<8x1x16xf32>
    %34 = vector.shape_cast %33 : vector<8x1x16xf32> to vector<8x16xf32>
    %35 = arith.maximumf %32, %34 : vector<8x16xf32>
    %c0_24 = arith.constant 0 : index
    %c12 = arith.constant 12 : index
    %c0_25 = arith.constant 0 : index
    %36 = vector.load %arg1[%c0_24, %c12, %c0_25] : memref<8x16x16xf32, #tpu.memory_space<vmem>>, vector<8x1x16xf32>
    %37 = vector.shape_cast %36 : vector<8x1x16xf32> to vector<8x16xf32>
    %38 = arith.maximumf %35, %37 : vector<8x16xf32>
    %c0_26 = arith.constant 0 : index
    %c13 = arith.constant 13 : index
    %c0_27 = arith.constant 0 : index
    %39 = vector.load %arg1[%c0_26, %c13, %c0_27] : memref<8x16x16xf32, #tpu.memory_space<vmem>>, vector<8x1x16xf32>
    %40 = vector.shape_cast %39 : vector<8x1x16xf32> to vector<8x16xf32>
    %41 = arith.maximumf %38, %40 : vector<8x16xf32>
    %c0_28 = arith.constant 0 : index
    %c14 = arith.constant 14 : index
    %c0_29 = arith.constant 0 : index
    %42 = vector.load %arg1[%c0_28, %c14, %c0_29] : memref<8x16x16xf32, #tpu.memory_space<vmem>>, vector<8x1x16xf32>
    %43 = vector.shape_cast %42 : vector<8x1x16xf32> to vector<8x16xf32>
    %44 = arith.maximumf %41, %43 : vector<8x16xf32>
    %c0_30 = arith.constant 0 : index
    %c15 = arith.constant 15 : index
    %c0_31 = arith.constant 0 : index
    %45 = vector.load %arg1[%c0_30, %c15, %c0_31] : memref<8x16x16xf32, #tpu.memory_space<vmem>>, vector<8x1x16xf32>
    %46 = vector.shape_cast %45 : vector<8x1x16xf32> to vector<8x16xf32>
    %47 = arith.maximumf %44, %46 : vector<8x16xf32>
    %cst = arith.constant dense<0xFF800000> : vector<8xf32>
    %48 = vector.multi_reduction <maximumf>, %47, %cst [1] : vector<8x16xf32> to vector<8xf32>
    %49 = vector.shape_cast %48 : vector<8xf32> to vector<8x1xf32>
    %c0_32 = arith.constant 0 : index
    %c0_33 = arith.constant 0 : index
    %50 = vector.load %arg2[%c0_32, %c0_33] : memref<8x14xf32, #tpu.memory_space<vmem>>, vector<8x1xf32>
    tpu.vector_store %arg2[%c0_32, %c0_33], %49 {strides = array<i32>} : memref<8x14xf32, #tpu.memory_space<vmem>>, vector<8x1xf32>,
    %c0_34 = arith.constant 0 : index
    %c0_35 = arith.constant 0 : index
    %c0_36 = arith.constant 0 : index
    %51 = vector.load %arg1[%c0_34, %c0_35, %c0_36] : memref<8x16x16xf32, #tpu.memory_space<vmem>>, vector<8x1x16xf32>
    %52 = vector.shape_cast %51 : vector<8x1x16xf32> to vector<8x16xf32>
    %c0_37 = arith.constant 0 : index
    %c1_38 = arith.constant 1 : index
    %c0_39 = arith.constant 0 : index
    %53 = vector.load %arg1[%c0_37, %c1_38, %c0_39] : memref<8x16x16xf32, #tpu.memory_space<vmem>>, vector<8x1x16xf32>
    %54 = vector.shape_cast %53 : vector<8x1x16xf32> to vector<8x16xf32>
    %55 = arith.maximumf %52, %54 : vector<8x16xf32>
    %c0_40 = arith.constant 0 : index
    %c2_41 = arith.constant 2 : index
    %c0_42 = arith.constant 0 : index
    %56 = vector.load %arg1[%c0_40, %c2_41, %c0_42] : memref<8x16x16xf32, #tpu.memory_space<vmem>>, vector<8x1x16xf32>
    %57 = vector.shape_cast %56 : vector<8x1x16xf32> to vector<8x16xf32>
    %58 = arith.maximumf %55, %57 : vector<8x16xf32>
    %c0_43 = arith.constant 0 : index
    %c3_44 = arith.constant 3 : index
    %c0_45 = arith.constant 0 : index
    %59 = vector.load %arg1[%c0_43, %c3_44, %c0_45] : memref<8x16x16xf32, #tpu.memory_space<vmem>>, vector<8x1x16xf32>
    %60 = vector.shape_cast %59 : vector<8x1x16xf32> to vector<8x16xf32>
    %61 = arith.maximumf %58, %60 : vector<8x16xf32>
    %c0_46 = arith.constant 0 : index
    %c4_47 = arith.constant 4 : index
    %c0_48 = arith.constant 0 : index
    %62 = vector.load %arg1[%c0_46, %c4_47, %c0_48] : memref<8x16x16xf32, #tpu.memory_space<vmem>>, vector<8x1x16xf32>
    %63 = vector.shape_cast %62 : vector<8x1x16xf32> to vector<8x16xf32>
    %64 = arith.maximumf %61, %63 : vector<8x16xf32>
    %c0_49 = arith.constant 0 : index
    %c5_50 = arith.constant 5 : index
    %c0_51 = arith.constant 0 : index
    %65 = vector.load %arg1[%c0_49, %c5_50, %c0_51] : memref<8x16x16xf32, #tpu.memory_space<vmem>>, vector<8x1x16xf32>
    %66 = vector.shape_cast %65 : vector<8x1x16xf32> to vector<8x16xf32>
    %67 = arith.maximumf %64, %66 : vector<8x16xf32>
    %c0_52 = arith.constant 0 : index
    %c6_53 = arith.constant 6 : index
    %c0_54 = arith.constant 0 : index
    %68 = vector.load %arg1[%c0_52, %c6_53, %c0_54] : memref<8x16x16xf32, #tpu.memory_space<vmem>>, vector<8x1x16xf32>
    %69 = vector.shape_cast %68 : vector<8x1x16xf32> to vector<8x16xf32>
    %70 = arith.maximumf %67, %69 : vector<8x16xf32>
    %c0_55 = arith.constant 0 : index
    %c7_56 = arith.constant 7 : index
    %c0_57 = arith.constant 0 : index
    %71 = vector.load %arg1[%c0_55, %c7_56, %c0_57] : memref<8x16x16xf32, #tpu.memory_space<vmem>>, vector<8x1x16xf32>
    %72 = vector.shape_cast %71 : vector<8x1x16xf32> to vector<8x16xf32>
    %73 = arith.maximumf %70, %72 : vector<8x16xf32>
    %c0_i32 = arith.constant 0 : i32
    %74 = vector.broadcast %c0_i32 : i32 to vector<1x16xi32>
    %75 = arith.cmpi sge, %0, %74 : vector<1x16xi32>
    %c8_i32 = arith.constant 8 : i32
    %76 = vector.broadcast %c8_i32 : i32 to vector<1x16xi32>
    %77 = arith.cmpi slt, %0, %76 : vector<1x16xi32>
    %78 = arith.andi %75, %77 : vector<1x16xi1>
    %cst_58 = arith.constant 0xFF800000 : f32
    %79 = vector.shape_cast %78 : vector<1x16xi1> to vector<1x16xi1>
    %80 = vector.broadcast %79 : vector<1x16xi1> to vector<8x16xi1>
    %81 = vector.broadcast %cst_58 : f32 to vector<8x16xf32>
    %82 = arith.select %80, %73, %81 : vector<8x16xi1>, vector<8x16xf32>
    %cst_59 = arith.constant dense<0xFF800000> : vector<8xf32>
    %83 = vector.multi_reduction <maximumf>, %82, %cst_59 [1] : vector<8x16xf32> to vector<8xf32>
    %84 = vector.shape_cast %83 : vector<8xf32> to vector<8x1xf32>
    %c0_60 = arith.constant 0 : index
    %c1_61 = arith.constant 1 : index
    %85 = vector.load %arg2[%c0_60, %c1_61] : memref<8x14xf32, #tpu.memory_space<vmem>>, vector<8x1xf32>
    tpu.vector_store %arg2[%c0_60, %c1_61], %84 {strides = array<i32>} : memref<8x14xf32, #tpu.memory_space<vmem>>, vector<8x1xf32>,
    %c8_i32_62 = arith.constant 8 : i32
    %86 = vector.broadcast %c8_i32_62 : i32 to vector<1x16xi32>
    %87 = arith.cmpi sge, %0, %86 : vector<1x16xi32>
    %c16_i32 = arith.constant 16 : i32
    %88 = vector.broadcast %c16_i32 : i32 to vector<1x16xi32>
    %89 = arith.cmpi slt, %0, %88 : vector<1x16xi32>
    %90 = arith.andi %87, %89 : vector<1x16xi1>
    %cst_63 = arith.constant 0xFF800000 : f32
    %91 = vector.shape_cast %90 : vector<1x16xi1> to vector<1x16xi1>
    %92 = vector.broadcast %91 : vector<1x16xi1> to vector<8x16xi1>
    %93 = vector.broadcast %cst_63 : f32 to vector<8x16xf32>
    %94 = arith.select %92, %73, %93 : vector<8x16xi1>, vector<8x16xf32>
    %cst_64 = arith.constant dense<0xFF800000> : vector<8xf32>
    %95 = vector.multi_reduction <maximumf>, %94, %cst_64 [1] : vector<8x16xf32> to vector<8xf32>
    %96 = vector.shape_cast %95 : vector<8xf32> to vector<8x1xf32>
    %c0_65 = arith.constant 0 : index
    %c2_66 = arith.constant 2 : index
    %97 = vector.load %arg2[%c0_65, %c2_66] : memref<8x14xf32, #tpu.memory_space<vmem>>, vector<8x1xf32>
    tpu.vector_store %arg2[%c0_65, %c2_66], %96 {strides = array<i32>} : memref<8x14xf32, #tpu.memory_space<vmem>>, vector<8x1xf32>,
    %c0_67 = arith.constant 0 : index
    %c8_68 = arith.constant 8 : index
    %c0_69 = arith.constant 0 : index
    %98 = vector.load %arg1[%c0_67, %c8_68, %c0_69] : memref<8x16x16xf32, #tpu.memory_space<vmem>>, vector<8x1x16xf32>
    %99 = vector.shape_cast %98 : vector<8x1x16xf32> to vector<8x16xf32>
    %c0_70 = arith.constant 0 : index
    %c9_71 = arith.constant 9 : index
    %c0_72 = arith.constant 0 : index
    %100 = vector.load %arg1[%c0_70, %c9_71, %c0_72] : memref<8x16x16xf32, #tpu.memory_space<vmem>>, vector<8x1x16xf32>
    %101 = vector.shape_cast %100 : vector<8x1x16xf32> to vector<8x16xf32>
    %102 = arith.maximumf %99, %101 : vector<8x16xf32>
    %c0_73 = arith.constant 0 : index
    %c10_74 = arith.constant 10 : index
    %c0_75 = arith.constant 0 : index
    %103 = vector.load %arg1[%c0_73, %c10_74, %c0_75] : memref<8x16x16xf32, #tpu.memory_space<vmem>>, vector<8x1x16xf32>
    %104 = vector.shape_cast %103 : vector<8x1x16xf32> to vector<8x16xf32>
    %105 = arith.maximumf %102, %104 : vector<8x16xf32>
    %c0_76 = arith.constant 0 : index
    %c11_77 = arith.constant 11 : index
    %c0_78 = arith.constant 0 : index
    %106 = vector.load %arg1[%c0_76, %c11_77, %c0_78] : memref<8x16x16xf32, #tpu.memory_space<vmem>>, vector<8x1x16xf32>
    %107 = vector.shape_cast %106 : vector<8x1x16xf32> to vector<8x16xf32>
    %108 = arith.maximumf %105, %107 : vector<8x16xf32>
    %c0_79 = arith.constant 0 : index
    %c12_80 = arith.constant 12 : index
    %c0_81 = arith.constant 0 : index
    %109 = vector.load %arg1[%c0_79, %c12_80, %c0_81] : memref<8x16x16xf32, #tpu.memory_space<vmem>>, vector<8x1x16xf32>
    %110 = vector.shape_cast %109 : vector<8x1x16xf32> to vector<8x16xf32>
    %111 = arith.maximumf %108, %110 : vector<8x16xf32>
    %c0_82 = arith.constant 0 : index
    %c13_83 = arith.constant 13 : index
    %c0_84 = arith.constant 0 : index
    %112 = vector.load %arg1[%c0_82, %c13_83, %c0_84] : memref<8x16x16xf32, #tpu.memory_space<vmem>>, vector<8x1x16xf32>
    %113 = vector.shape_cast %112 : vector<8x1x16xf32> to vector<8x16xf32>
    %114 = arith.maximumf %111, %113 : vector<8x16xf32>
    %c0_85 = arith.constant 0 : index
    %c14_86 = arith.constant 14 : index
    %c0_87 = arith.constant 0 : index
    %115 = vector.load %arg1[%c0_85, %c14_86, %c0_87] : memref<8x16x16xf32, #tpu.memory_space<vmem>>, vector<8x1x16xf32>
    %116 = vector.shape_cast %115 : vector<8x1x16xf32> to vector<8x16xf32>
    %117 = arith.maximumf %114, %116 : vector<8x16xf32>
    %c0_88 = arith.constant 0 : index
    %c15_89 = arith.constant 15 : index
    %c0_90 = arith.constant 0 : index
    %118 = vector.load %arg1[%c0_88, %c15_89, %c0_90] : memref<8x16x16xf32, #tpu.memory_space<vmem>>, vector<8x1x16xf32>
    %119 = vector.shape_cast %118 : vector<8x1x16xf32> to vector<8x16xf32>
    %120 = arith.maximumf %117, %119 : vector<8x16xf32>
    %c0_i32_91 = arith.constant 0 : i32
    %121 = vector.broadcast %c0_i32_91 : i32 to vector<1x16xi32>
    %122 = arith.cmpi sge, %0, %121 : vector<1x16xi32>
    %c8_i32_92 = arith.constant 8 : i32
    %123 = vector.broadcast %c8_i32_92 : i32 to vector<1x16xi32>
    %124 = arith.cmpi slt, %0, %123 : vector<1x16xi32>
    %125 = arith.andi %122, %124 : vector<1x16xi1>
    %cst_93 = arith.constant 0xFF800000 : f32
    %126 = vector.shape_cast %125 : vector<1x16xi1> to vector<1x16xi1>
    %127 = vector.broadcast %126 : vector<1x16xi1> to vector<8x16xi1>
    %128 = vector.broadcast %cst_93 : f32 to vector<8x16xf32>
    %129 = arith.select %127, %120, %128 : vector<8x16xi1>, vector<8x16xf32>
    %cst_94 = arith.constant dense<0xFF800000> : vector<8xf32>
    %130 = vector.multi_reduction <maximumf>, %129, %cst_94 [1] : vector<8x16xf32> to vector<8xf32>
    %131 = vector.shape_cast %130 : vector<8xf32> to vector<8x1xf32>
    %c0_95 = arith.constant 0 : index
    %c3_96 = arith.constant 3 : index
    %132 = vector.load %arg2[%c0_95, %c3_96] : memref<8x14xf32, #tpu.memory_space<vmem>>, vector<8x1xf32>
    tpu.vector_store %arg2[%c0_95, %c3_96], %131 {strides = array<i32>} : memref<8x14xf32, #tpu.memory_space<vmem>>, vector<8x1xf32>,
    %c8_i32_97 = arith.constant 8 : i32
    %133 = vector.broadcast %c8_i32_97 : i32 to vector<1x16xi32>
    %134 = arith.cmpi sge, %0, %133 : vector<1x16xi32>
    %c16_i32_98 = arith.constant 16 : i32
    %135 = vector.broadcast %c16_i32_98 : i32 to vector<1x16xi32>
    %136 = arith.cmpi slt, %0, %135 : vector<1x16xi32>
    %137 = arith.andi %134, %136 : vector<1x16xi1>
    %cst_99 = arith.constant 0xFF800000 : f32
    %138 = vector.shape_cast %137 : vector<1x16xi1> to vector<1x16xi1>
    %139 = vector.broadcast %138 : vector<1x16xi1> to vector<8x16xi1>
    %140 = vector.broadcast %cst_99 : f32 to vector<8x16xf32>
    %141 = arith.select %139, %120, %140 : vector<8x16xi1>, vector<8x16xf32>
    %cst_100 = arith.constant dense<0xFF800000> : vector<8xf32>
    %142 = vector.multi_reduction <maximumf>, %141, %cst_100 [1] : vector<8x16xf32> to vector<8xf32>
    %143 = vector.shape_cast %142 : vector<8xf32> to vector<8x1xf32>
    %c0_101 = arith.constant 0 : index
    %c4_102 = arith.constant 4 : index
    %144 = vector.load %arg2[%c0_101, %c4_102] : memref<8x14xf32, #tpu.memory_space<vmem>>, vector<8x1xf32>
    tpu.vector_store %arg2[%c0_101, %c4_102], %143 {strides = array<i32>} : memref<8x14xf32, #tpu.memory_space<vmem>>, vector<8x1xf32>,
    %c0_103 = arith.constant 0 : index
    %c0_104 = arith.constant 0 : index
    %c0_105 = arith.constant 0 : index
    %145 = vector.load %arg1[%c0_103, %c0_104, %c0_105] : memref<8x16x16xf32, #tpu.memory_space<vmem>>, vector<8x1x16xf32>
    %146 = vector.shape_cast %145 : vector<8x1x16xf32> to vector<8x16xf32>
    %c0_106 = arith.constant 0 : index
    %c1_107 = arith.constant 1 : index
    %c0_108 = arith.constant 0 : index
    %147 = vector.load %arg1[%c0_106, %c1_107, %c0_108] : memref<8x16x16xf32, #tpu.memory_space<vmem>>, vector<8x1x16xf32>
    %148 = vector.shape_cast %147 : vector<8x1x16xf32> to vector<8x16xf32>
    %149 = arith.maximumf %146, %148 : vector<8x16xf32>
    %c0_109 = arith.constant 0 : index
    %c2_110 = arith.constant 2 : index
    %c0_111 = arith.constant 0 : index
    %150 = vector.load %arg1[%c0_109, %c2_110, %c0_111] : memref<8x16x16xf32, #tpu.memory_space<vmem>>, vector<8x1x16xf32>
    %151 = vector.shape_cast %150 : vector<8x1x16xf32> to vector<8x16xf32>
    %152 = arith.maximumf %149, %151 : vector<8x16xf32>
    %c0_112 = arith.constant 0 : index
    %c3_113 = arith.constant 3 : index
    %c0_114 = arith.constant 0 : index
    %153 = vector.load %arg1[%c0_112, %c3_113, %c0_114] : memref<8x16x16xf32, #tpu.memory_space<vmem>>, vector<8x1x16xf32>
    %154 = vector.shape_cast %153 : vector<8x1x16xf32> to vector<8x16xf32>
    %155 = arith.maximumf %152, %154 : vector<8x16xf32>
    %c0_115 = arith.constant 0 : index
    %c4_116 = arith.constant 4 : index
    %c0_117 = arith.constant 0 : index
    %156 = vector.load %arg1[%c0_115, %c4_116, %c0_117] : memref<8x16x16xf32, #tpu.memory_space<vmem>>, vector<8x1x16xf32>
    %157 = vector.shape_cast %156 : vector<8x1x16xf32> to vector<8x16xf32>
    %158 = arith.maximumf %155, %157 : vector<8x16xf32>
    %c0_i32_118 = arith.constant 0 : i32
    %159 = vector.broadcast %c0_i32_118 : i32 to vector<1x16xi32>
    %160 = arith.cmpi sge, %0, %159 : vector<1x16xi32>
    %c5_i32 = arith.constant 5 : i32
    %161 = vector.broadcast %c5_i32 : i32 to vector<1x16xi32>
    %162 = arith.cmpi slt, %0, %161 : vector<1x16xi32>
    %163 = arith.andi %160, %162 : vector<1x16xi1>
    %cst_119 = arith.constant 0xFF800000 : f32
    %164 = vector.shape_cast %163 : vector<1x16xi1> to vector<1x16xi1>
    %165 = vector.broadcast %164 : vector<1x16xi1> to vector<8x16xi1>
    %166 = vector.broadcast %cst_119 : f32 to vector<8x16xf32>
    %167 = arith.select %165, %158, %166 : vector<8x16xi1>, vector<8x16xf32>
    %cst_120 = arith.constant dense<0xFF800000> : vector<8xf32>
    %168 = vector.multi_reduction <maximumf>, %167, %cst_120 [1] : vector<8x16xf32> to vector<8xf32>
    %169 = vector.shape_cast %168 : vector<8xf32> to vector<8x1xf32>
    %c0_121 = arith.constant 0 : index
    %c5_122 = arith.constant 5 : index
    %170 = vector.load %arg2[%c0_121, %c5_122] : memref<8x14xf32, #tpu.memory_space<vmem>>, vector<8x1xf32>
    tpu.vector_store %arg2[%c0_121, %c5_122], %169 {strides = array<i32>} : memref<8x14xf32, #tpu.memory_space<vmem>>, vector<8x1xf32>,
    %c5_i32_123 = arith.constant 5 : i32
    %171 = vector.broadcast %c5_i32_123 : i32 to vector<1x16xi32>
    %172 = arith.cmpi sge, %0, %171 : vector<1x16xi32>
    %c11_i32 = arith.constant 11 : i32
    %173 = vector.broadcast %c11_i32 : i32 to vector<1x16xi32>
    %174 = arith.cmpi slt, %0, %173 : vector<1x16xi32>
    %175 = arith.andi %172, %174 : vector<1x16xi1>
    %cst_124 = arith.constant 0xFF800000 : f32
    %176 = vector.shape_cast %175 : vector<1x16xi1> to vector<1x16xi1>
    %177 = vector.broadcast %176 : vector<1x16xi1> to vector<8x16xi1>
    %178 = vector.broadcast %cst_124 : f32 to vector<8x16xf32>
    %179 = arith.select %177, %158, %178 : vector<8x16xi1>, vector<8x16xf32>
    %cst_125 = arith.constant dense<0xFF800000> : vector<8xf32>
    %180 = vector.multi_reduction <maximumf>, %179, %cst_125 [1] : vector<8x16xf32> to vector<8xf32>
    %181 = vector.shape_cast %180 : vector<8xf32> to vector<8x1xf32>
    %c0_126 = arith.constant 0 : index
    %c6_127 = arith.constant 6 : index
    %182 = vector.load %arg2[%c0_126, %c6_127] : memref<8x14xf32, #tpu.memory_space<vmem>>, vector<8x1xf32>
    tpu.vector_store %arg2[%c0_126, %c6_127], %181 {strides = array<i32>} : memref<8x14xf32, #tpu.memory_space<vmem>>, vector<8x1xf32>,
    %c11_i32_128 = arith.constant 11 : i32
    %183 = vector.broadcast %c11_i32_128 : i32 to vector<1x16xi32>
    %184 = arith.cmpi sge, %0, %183 : vector<1x16xi32>
    %c16_i32_129 = arith.constant 16 : i32
    %185 = vector.broadcast %c16_i32_129 : i32 to vector<1x16xi32>
    %186 = arith.cmpi slt, %0, %185 : vector<1x16xi32>
    %187 = arith.andi %184, %186 : vector<1x16xi1>
    %cst_130 = arith.constant 0xFF800000 : f32
    %188 = vector.shape_cast %187 : vector<1x16xi1> to vector<1x16xi1>
    %189 = vector.broadcast %188 : vector<1x16xi1> to vector<8x16xi1>
    %190 = vector.broadcast %cst_130 : f32 to vector<8x16xf32>
    %191 = arith.select %189, %158, %190 : vector<8x16xi1>, vector<8x16xf32>
    %cst_131 = arith.constant dense<0xFF800000> : vector<8xf32>
    %192 = vector.multi_reduction <maximumf>, %191, %cst_131 [1] : vector<8x16xf32> to vector<8xf32>
    %193 = vector.shape_cast %192 : vector<8xf32> to vector<8x1xf32>
    %c0_132 = arith.constant 0 : index
    %c7_133 = arith.constant 7 : index
    %194 = vector.load %arg2[%c0_132, %c7_133] : memref<8x14xf32, #tpu.memory_space<vmem>>, vector<8x1xf32>
    tpu.vector_store %arg2[%c0_132, %c7_133], %193 {strides = array<i32>} : memref<8x14xf32, #tpu.memory_space<vmem>>, vector<8x1xf32>,
    %c0_134 = arith.constant 0 : index
    %c5_135 = arith.constant 5 : index
    %c0_136 = arith.constant 0 : index
    %195 = vector.load %arg1[%c0_134, %c5_135, %c0_136] : memref<8x16x16xf32, #tpu.memory_space<vmem>>, vector<8x1x16xf32>
    %196 = vector.shape_cast %195 : vector<8x1x16xf32> to vector<8x16xf32>
    %c0_137 = arith.constant 0 : index
    %c6_138 = arith.constant 6 : index
    %c0_139 = arith.constant 0 : index
    %197 = vector.load %arg1[%c0_137, %c6_138, %c0_139] : memref<8x16x16xf32, #tpu.memory_space<vmem>>, vector<8x1x16xf32>
    %198 = vector.shape_cast %197 : vector<8x1x16xf32> to vector<8x16xf32>
    %199 = arith.maximumf %196, %198 : vector<8x16xf32>
    %c0_140 = arith.constant 0 : index
    %c7_141 = arith.constant 7 : index
    %c0_142 = arith.constant 0 : index
    %200 = vector.load %arg1[%c0_140, %c7_141, %c0_142] : memref<8x16x16xf32, #tpu.memory_space<vmem>>, vector<8x1x16xf32>
    %201 = vector.shape_cast %200 : vector<8x1x16xf32> to vector<8x16xf32>
    %202 = arith.maximumf %199, %201 : vector<8x16xf32>
    %c0_143 = arith.constant 0 : index
    %c8_144 = arith.constant 8 : index
    %c0_145 = arith.constant 0 : index
    %203 = vector.load %arg1[%c0_143, %c8_144, %c0_145] : memref<8x16x16xf32, #tpu.memory_space<vmem>>, vector<8x1x16xf32>
    %204 = vector.shape_cast %203 : vector<8x1x16xf32> to vector<8x16xf32>
    %205 = arith.maximumf %202, %204 : vector<8x16xf32>
    %c0_146 = arith.constant 0 : index
    %c9_147 = arith.constant 9 : index
    %c0_148 = arith.constant 0 : index
    %206 = vector.load %arg1[%c0_146, %c9_147, %c0_148] : memref<8x16x16xf32, #tpu.memory_space<vmem>>, vector<8x1x16xf32>
    %207 = vector.shape_cast %206 : vector<8x1x16xf32> to vector<8x16xf32>
    %208 = arith.maximumf %205, %207 : vector<8x16xf32>
    %c0_149 = arith.constant 0 : index
    %c10_150 = arith.constant 10 : index
    %c0_151 = arith.constant 0 : index
    %209 = vector.load %arg1[%c0_149, %c10_150, %c0_151] : memref<8x16x16xf32, #tpu.memory_space<vmem>>, vector<8x1x16xf32>
    %210 = vector.shape_cast %209 : vector<8x1x16xf32> to vector<8x16xf32>
    %211 = arith.maximumf %208, %210 : vector<8x16xf32>
    %c0_i32_152 = arith.constant 0 : i32
    %212 = vector.broadcast %c0_i32_152 : i32 to vector<1x16xi32>
    %213 = arith.cmpi sge, %0, %212 : vector<1x16xi32>
    %c5_i32_153 = arith.constant 5 : i32
    %214 = vector.broadcast %c5_i32_153 : i32 to vector<1x16xi32>
    %215 = arith.cmpi slt, %0, %214 : vector<1x16xi32>
    %216 = arith.andi %213, %215 : vector<1x16xi1>
    %cst_154 = arith.constant 0xFF800000 : f32
    %217 = vector.shape_cast %216 : vector<1x16xi1> to vector<1x16xi1>
    %218 = vector.broadcast %217 : vector<1x16xi1> to vector<8x16xi1>
    %219 = vector.broadcast %cst_154 : f32 to vector<8x16xf32>
    %220 = arith.select %218, %211, %219 : vector<8x16xi1>, vector<8x16xf32>
    %cst_155 = arith.constant dense<0xFF800000> : vector<8xf32>
    %221 = vector.multi_reduction <maximumf>, %220, %cst_155 [1] : vector<8x16xf32> to vector<8xf32>
    %222 = vector.shape_cast %221 : vector<8xf32> to vector<8x1xf32>
    %c0_156 = arith.constant 0 : index
    %c8_157 = arith.constant 8 : index
    %223 = vector.load %arg2[%c0_156, %c8_157] : memref<8x14xf32, #tpu.memory_space<vmem>>, vector<8x1xf32>
    tpu.vector_store %arg2[%c0_156, %c8_157], %222 {strides = array<i32>} : memref<8x14xf32, #tpu.memory_space<vmem>>, vector<8x1xf32>,
    %c5_i32_158 = arith.constant 5 : i32
    %224 = vector.broadcast %c5_i32_158 : i32 to vector<1x16xi32>
    %225 = arith.cmpi sge, %0, %224 : vector<1x16xi32>
    %c11_i32_159 = arith.constant 11 : i32
    %226 = vector.broadcast %c11_i32_159 : i32 to vector<1x16xi32>
    %227 = arith.cmpi slt, %0, %226 : vector<1x16xi32>
    %228 = arith.andi %225, %227 : vector<1x16xi1>
    %cst_160 = arith.constant 0xFF800000 : f32
    %229 = vector.shape_cast %228 : vector<1x16xi1> to vector<1x16xi1>
    %230 = vector.broadcast %229 : vector<1x16xi1> to vector<8x16xi1>
    %231 = vector.broadcast %cst_160 : f32 to vector<8x16xf32>
    %232 = arith.select %230, %211, %231 : vector<8x16xi1>, vector<8x16xf32>
    %cst_161 = arith.constant dense<0xFF800000> : vector<8xf32>
    %233 = vector.multi_reduction <maximumf>, %232, %cst_161 [1] : vector<8x16xf32> to vector<8xf32>
    %234 = vector.shape_cast %233 : vector<8xf32> to vector<8x1xf32>
    %c0_162 = arith.constant 0 : index
    %c9_163 = arith.constant 9 : index
    %235 = vector.load %arg2[%c0_162, %c9_163] : memref<8x14xf32, #tpu.memory_space<vmem>>, vector<8x1xf32>
    tpu.vector_store %arg2[%c0_162, %c9_163], %234 {strides = array<i32>} : memref<8x14xf32, #tpu.memory_space<vmem>>, vector<8x1xf32>,
    %c11_i32_164 = arith.constant 11 : i32
    %236 = vector.broadcast %c11_i32_164 : i32 to vector<1x16xi32>
    %237 = arith.cmpi sge, %0, %236 : vector<1x16xi32>
    %c16_i32_165 = arith.constant 16 : i32
    %238 = vector.broadcast %c16_i32_165 : i32 to vector<1x16xi32>
    %239 = arith.cmpi slt, %0, %238 : vector<1x16xi32>
    %240 = arith.andi %237, %239 : vector<1x16xi1>
    %cst_166 = arith.constant 0xFF800000 : f32
    %241 = vector.shape_cast %240 : vector<1x16xi1> to vector<1x16xi1>
    %242 = vector.broadcast %241 : vector<1x16xi1> to vector<8x16xi1>
    %243 = vector.broadcast %cst_166 : f32 to vector<8x16xf32>
    %244 = arith.select %242, %211, %243 : vector<8x16xi1>, vector<8x16xf32>
    %cst_167 = arith.constant dense<0xFF800000> : vector<8xf32>
    %245 = vector.multi_reduction <maximumf>, %244, %cst_167 [1] : vector<8x16xf32> to vector<8xf32>
    %246 = vector.shape_cast %245 : vector<8xf32> to vector<8x1xf32>
    %c0_168 = arith.constant 0 : index
    %c10_169 = arith.constant 10 : index
    %247 = vector.load %arg2[%c0_168, %c10_169] : memref<8x14xf32, #tpu.memory_space<vmem>>, vector<8x1xf32>
    tpu.vector_store %arg2[%c0_168, %c10_169], %246 {strides = array<i32>} : memref<8x14xf32, #tpu.memory_space<vmem>>, vector<8x1xf32>,
    %c0_170 = arith.constant 0 : index
    %c11_171 = arith.constant 11 : index
    %c0_172 = arith.constant 0 : index
    %248 = vector.load %arg1[%c0_170, %c11_171, %c0_172] : memref<8x16x16xf32, #tpu.memory_space<vmem>>, vector<8x1x16xf32>
    %249 = vector.shape_cast %248 : vector<8x1x16xf32> to vector<8x16xf32>
    %c0_173 = arith.constant 0 : index
    %c12_174 = arith.constant 12 : index
    %c0_175 = arith.constant 0 : index
    %250 = vector.load %arg1[%c0_173, %c12_174, %c0_175] : memref<8x16x16xf32, #tpu.memory_space<vmem>>, vector<8x1x16xf32>
    %251 = vector.shape_cast %250 : vector<8x1x16xf32> to vector<8x16xf32>
    %252 = arith.maximumf %249, %251 : vector<8x16xf32>
    %c0_176 = arith.constant 0 : index
    %c13_177 = arith.constant 13 : index
    %c0_178 = arith.constant 0 : index
    %253 = vector.load %arg1[%c0_176, %c13_177, %c0_178] : memref<8x16x16xf32, #tpu.memory_space<vmem>>, vector<8x1x16xf32>
    %254 = vector.shape_cast %253 : vector<8x1x16xf32> to vector<8x16xf32>
    %255 = arith.maximumf %252, %254 : vector<8x16xf32>
    %c0_179 = arith.constant 0 : index
    %c14_180 = arith.constant 14 : index
    %c0_181 = arith.constant 0 : index
    %256 = vector.load %arg1[%c0_179, %c14_180, %c0_181] : memref<8x16x16xf32, #tpu.memory_space<vmem>>, vector<8x1x16xf32>
    %257 = vector.shape_cast %256 : vector<8x1x16xf32> to vector<8x16xf32>
    %258 = arith.maximumf %255, %257 : vector<8x16xf32>
    %c0_182 = arith.constant 0 : index
    %c15_183 = arith.constant 15 : index
    %c0_184 = arith.constant 0 : index
    %259 = vector.load %arg1[%c0_182, %c15_183, %c0_184] : memref<8x16x16xf32, #tpu.memory_space<vmem>>, vector<8x1x16xf32>
    %260 = vector.shape_cast %259 : vector<8x1x16xf32> to vector<8x16xf32>
    %261 = arith.maximumf %258, %260 : vector<8x16xf32>
    %c0_i32_185 = arith.constant 0 : i32
    %262 = vector.broadcast %c0_i32_185 : i32 to vector<1x16xi32>
    %263 = arith.cmpi sge, %0, %262 : vector<1x16xi32>
    %c5_i32_186 = arith.constant 5 : i32
    %264 = vector.broadcast %c5_i32_186 : i32 to vector<1x16xi32>
    %265 = arith.cmpi slt, %0, %264 : vector<1x16xi32>
    %266 = arith.andi %263, %265 : vector<1x16xi1>
    %cst_187 = arith.constant 0xFF800000 : f32
    %267 = vector.shape_cast %266 : vector<1x16xi1> to vector<1x16xi1>
    %268 = vector.broadcast %267 : vector<1x16xi1> to vector<8x16xi1>
    %269 = vector.broadcast %cst_187 : f32 to vector<8x16xf32>
    %270 = arith.select %268, %261, %269 : vector<8x16xi1>, vector<8x16xf32>
    %cst_188 = arith.constant dense<0xFF800000> : vector<8xf32>
    %271 = vector.multi_reduction <maximumf>, %270, %cst_188 [1] : vector<8x16xf32> to vector<8xf32>
    %272 = vector.shape_cast %271 : vector<8xf32> to vector<8x1xf32>
    %c0_189 = arith.constant 0 : index
    %c11_190 = arith.constant 11 : index
    %273 = vector.load %arg2[%c0_189, %c11_190] : memref<8x14xf32, #tpu.memory_space<vmem>>, vector<8x1xf32>
    tpu.vector_store %arg2[%c0_189, %c11_190], %272 {strides = array<i32>} : memref<8x14xf32, #tpu.memory_space<vmem>>, vector<8x1xf32>,
    %c5_i32_191 = arith.constant 5 : i32
    %274 = vector.broadcast %c5_i32_191 : i32 to vector<1x16xi32>
    %275 = arith.cmpi sge, %0, %274 : vector<1x16xi32>
    %c11_i32_192 = arith.constant 11 : i32
    %276 = vector.broadcast %c11_i32_192 : i32 to vector<1x16xi32>
    %277 = arith.cmpi slt, %0, %276 : vector<1x16xi32>
    %278 = arith.andi %275, %277 : vector<1x16xi1>
    %cst_193 = arith.constant 0xFF800000 : f32
    %279 = vector.shape_cast %278 : vector<1x16xi1> to vector<1x16xi1>
    %280 = vector.broadcast %279 : vector<1x16xi1> to vector<8x16xi1>
    %281 = vector.broadcast %cst_193 : f32 to vector<8x16xf32>
    %282 = arith.select %280, %261, %281 : vector<8x16xi1>, vector<8x16xf32>
    %cst_194 = arith.constant dense<0xFF800000> : vector<8xf32>
    %283 = vector.multi_reduction <maximumf>, %282, %cst_194 [1] : vector<8x16xf32> to vector<8xf32>
    %284 = vector.shape_cast %283 : vector<8xf32> to vector<8x1xf32>
    %c0_195 = arith.constant 0 : index
    %c12_196 = arith.constant 12 : index
    %285 = vector.load %arg2[%c0_195, %c12_196] : memref<8x14xf32, #tpu.memory_space<vmem>>, vector<8x1xf32>
    tpu.vector_store %arg2[%c0_195, %c12_196], %284 {strides = array<i32>} : memref<8x14xf32, #tpu.memory_space<vmem>>, vector<8x1xf32>,
    %c11_i32_197 = arith.constant 11 : i32
    %286 = vector.broadcast %c11_i32_197 : i32 to vector<1x16xi32>
    %287 = arith.cmpi sge, %0, %286 : vector<1x16xi32>
    %c16_i32_198 = arith.constant 16 : i32
    %288 = vector.broadcast %c16_i32_198 : i32 to vector<1x16xi32>
    %289 = arith.cmpi slt, %0, %288 : vector<1x16xi32>
    %290 = arith.andi %287, %289 : vector<1x16xi1>
    %cst_199 = arith.constant 0xFF800000 : f32
    %291 = vector.shape_cast %290 : vector<1x16xi1> to vector<1x16xi1>
    %292 = vector.broadcast %291 : vector<1x16xi1> to vector<8x16xi1>
    %293 = vector.broadcast %cst_199 : f32 to vector<8x16xf32>
    %294 = arith.select %292, %261, %293 : vector<8x16xi1>, vector<8x16xf32>
    %cst_200 = arith.constant dense<0xFF800000> : vector<8xf32>
    %295 = vector.multi_reduction <maximumf>, %294, %cst_200 [1] : vector<8x16xf32> to vector<8xf32>
    %296 = vector.shape_cast %295 : vector<8xf32> to vector<8x1xf32>
    %c0_201 = arith.constant 0 : index
    %c13_202 = arith.constant 13 : index
    %297 = vector.load %arg2[%c0_201, %c13_202] : memref<8x14xf32, #tpu.memory_space<vmem>>, vector<8x1xf32>
    tpu.vector_store %arg2[%c0_201, %c13_202], %296 {strides = array<i32>} : memref<8x14xf32, #tpu.memory_space<vmem>>, vector<8x1xf32>,
    return
  }
  func.func @transform_0(%arg0: i32) -> (i32, i32, i32) {
    %c0_i32 = arith.constant 0 : i32
    %c0_i32_0 = arith.constant 0 : i32
    %c0_i32_1 = arith.constant 0 : i32
    return %arg0, %c0_i32, %c0_i32_0 : i32, i32, i32
  }
  func.func @transform_1(%arg0: i32) -> (i32, i32) {
    %c0_i32 = arith.constant 0 : i32
    %c0_i32_0 = arith.constant 0 : i32
    return %arg0, %c0_i32 : i32, i32
  }
}

</mosaic_0001>

<bundles_post_ra>
// kernel: tpu_custom_call.1
= control target key start
LH: loop header
LB: loop body
LE: loop exit
PB: predicated region body
PF: predicated region fallthrough
CT: control target
= control target key end

     0   :  { %6 = vsyncpa [#allocation3], 0  ;;  %s1220_s0 = inlined_call_operand.hbm [shape: f32[8,16,16], index: 0, kind: input, shape index: {}]   ;;  %s1221_s1 = inlined_call_operand.hbm [shape: f32[8,14], index: 1, kind: output, shape index: {}]  }
   0x1   :  { %7 = vsyncpa [#allocation4], 0  ;;  %s12_s8 = sshll.u32 %s1220_s0, 4  ;;  %s1072_s9 = smov [#allocation2]   ;;  %s13_s8 = int_to_ptr.hbm [resolvable:$true] %s12_s8 }
   0x2   :  { %s14_s10 = sshll.u32 %s1072_s9, 4  ;;  %s1073_s11 = smov 128   ;;  %s15_s10 = int_to_ptr.vmem [resolvable:$true] %s14_s10 }
   0x3   :  { %s1074_s12 = smov 8  }
   0x4   :  { %20 = dma.hbm_to_vmem [thread:$0]  %s13_s8, 2048, %s15_s10, [#allocation3], %s1073_s11, %s1073_s11, %s1074_s12  }
   0x5   :  { %1068 = dma.done.wait [#allocation3], 2048  }
   0x6   :  { %1069 = vsyncadd [#allocation3], 4294965248  ;;  %v25_v0 = vlaneseq  ;;  %v631_v2 = vld [vmem:[#allocation2] sm:$0x1]  ;;  %v632_v3 = vld [vmem:[#allocation2 + $0x10] sm:$0x1] }
   0x7   :  { %v633_v4 = vld [vmem:[#allocation2 + $0x20] sm:$0x1]  ;;  %v634_v5 = vld [vmem:[#allocation2 + $0x30] sm:$0x1]  ;;  %v639_v10 = vld [vmem:[#allocation2 + $0x1] sm:$0x1] }
   0x8   :  { %v1089_v1 = vand.u32 127, %v25_v0  ;;  %v635_v6 = vld [vmem:[#allocation2 + $0x40] sm:$0x1]  ;;  %v636_v7 = vld [vmem:[#allocation2 + $0x50] sm:$0x1]  ;;  %v647_v14 = vmax.f32 %v631_v2, %v639_v10  ;;  %vm284_vm2 = vcmask 1041409  }
   0x9   :  { %v637_v8 = vld [vmem:[#allocation2 + $0x60] sm:$0x1]  ;;  %v638_v9 = vld [vmem:[#allocation2 + $0x70] sm:$0x1]  ;;  %v640_v11 = vld [vmem:[#allocation2 + $0x11] sm:$0x1] }
   0xa   :  { %v641_v12 = vld [vmem:[#allocation2 + $0x21] sm:$0x1]  ;;  %v642_v13 = vld [vmem:[#allocation2 + $0x31] sm:$0x1]  ;;  %v648_v18 = vmax.f32 %v632_v3, %v640_v11  ;;  %vm736_vm0 = vcmp.ge.s32.totalorder %v1089_v1, 5  ;;  %vm737_vm1 = vcmp.lt.s32.totalorder %v1089_v1, 11 }
   0xb   :  { %v643_v15 = vld [vmem:[#allocation2 + $0x41] sm:$0x1]  ;;  %v644_v16 = vld [vmem:[#allocation2 + $0x51] sm:$0x1]  ;;  %v649_v19 = vmax.f32 %v633_v4, %v641_v12  ;;  %v650_v20 = vmax.f32 %v634_v5, %v642_v13  ;;  %v655_v25 = vld [vmem:[#allocation2 + $0x2] sm:$0x1] }
   0xc   :  { %v645_v17 = vld [vmem:[#allocation2 + $0x61] sm:$0x1]  ;;  %v646_v21 = vld [vmem:[#allocation2 + $0x71] sm:$0x1]  ;;  %v651_v22 = vmax.f32 %v635_v6, %v643_v15  ;;  %v652_v23 = vmax.f32 %v636_v7, %v644_v16  ;;  %v656_v26 = vld [vmem:[#allocation2 + $0x12] sm:$0x1]  ;;  %v663_v31 = vmax.f32 %v647_v14, %v655_v25 }
   0xd   :  { %v653_v24 = vmax.f32 %v637_v8, %v645_v17  ;;  %vm466_vm3 = vcmp.lt.s32.totalorder %v1089_v1, 16  ;;  %vm747_vm4 = vcmp.ge.s32.totalorder %v1089_v1, 11  ;;  %vm287_vm5 = vcmask 1042434   ;;  %v657_v28 = vld [vmem:[#allocation2 + $0x22] sm:$0x1]  ;;  %vm1100_vm13 = vmand %vm736_vm0, %vm737_vm1  ;;  %s1075_s0 = smov [#allocation5]  }
   0xe   :  { %v654_v27 = vmax.f32 %v638_v9, %v646_v21  ;;  %v658_v29 = vld [vmem:[#allocation2 + $0x32] sm:$0x1]  ;;  %v659_v30 = vld [vmem:[#allocation2 + $0x42] sm:$0x1]  ;;  %v664_v32 = vmax.f32 %v648_v18, %v656_v26  ;;  %vm290_vm6 = vcmask 1043459   ;;  %v665_v36 = vmax.f32 %v649_v19, %v657_v28  ;;  %vm1109_vm14 = vmand %vm747_vm4, %vm466_vm3  ;;  %s1004_s13 = sshll.u32 %s1075_s0, 4  ;;  %s1005_s13 = int_to_ptr.vmem [resolvable:$true] %s1004_s13 }
   0xf   :  { %v660_v33 = vld [vmem:[#allocation2 + $0x52] sm:$0x1]  ;;  %v661_v34 = vld [vmem:[#allocation2 + $0x62] sm:$0x1]  ;;  %v666_v37 = vmax.f32 %v650_v20, %v658_v29  ;;  %v667_v38 = vmax.f32 %v651_v22, %v659_v30  ;;  %vm293_vm7 = vcmask 1044484   ;;  %vm296_vm8 = vcmask 1045509  }
  0x10   :  { %v662_v35 = vld [vmem:[#allocation2 + $0x72] sm:$0x1]  ;;  %v668_v39 = vmax.f32 %v652_v23, %v660_v33  ;;  %v669_v40 = vmax.f32 %v653_v24, %v661_v34  ;;  %v671_v42 = vld [vmem:[#allocation2 + $0x3] sm:$0x1]  ;;  %v672_v43 = vld [vmem:[#allocation2 + $0x13] sm:$0x1] }
  0x11   :  { %v670_v41 = vmax.f32 %v654_v27, %v662_v35  ;;  %v673_v44 = vld [vmem:[#allocation2 + $0x23] sm:$0x1]  ;;  %v674_v45 = vld [vmem:[#allocation2 + $0x33] sm:$0x1]  ;;  %v679_v48 = vmax.f32 %v663_v31, %v671_v42  ;;  %v680_v49 = vmax.f32 %v664_v32, %v672_v43  ;;  %vm299_vm9 = vcmask 1046534   ;;  %s1006_s16 = sshll.u32 %s1221_s1, 4  ;;  %s1007_s16 = int_to_ptr.hbm [resolvable:$true] %s1006_s16 }
  0x12   :  { %v675_v46 = vld [vmem:[#allocation2 + $0x43] sm:$0x1]  ;;  %v676_v47 = vld [vmem:[#allocation2 + $0x53] sm:$0x1]  ;;  %v681_v50 = vmax.f32 %v665_v36, %v673_v44  ;;  %v682_v53 = vmax.f32 %v666_v37, %v674_v45  ;;  %v687_v56 = vld [vmem:[#allocation2 + $0x4] sm:$0x1] }
  0x13   :  { %v677_v51 = vld [vmem:[#allocation2 + $0x63] sm:$0x1]  ;;  %v678_v52 = vld [vmem:[#allocation2 + $0x73] sm:$0x1]  ;;  %v683_v54 = vmax.f32 %v667_v38, %v675_v46  ;;  %v684_v55 = vmax.f32 %v668_v39, %v676_v47  ;;  %vm302_vm10 = vcmask 1047559   ;;  %v695_v2 = vmax.f32 %v679_v48, %v687_v56 }
  0x14   :  { %v685_v57 = vmax.f32 %v669_v40, %v677_v51  ;;  %v686_v58 = vmax.f32 %v670_v41, %v678_v52  ;;  %v688_v59 = vld [vmem:[#allocation2 + $0x14] sm:$0x1]  ;;  %v689_v60 = vld [vmem:[#allocation2 + $0x24] sm:$0x1]  ;;  %vm305_vm11 = vcmask 130048   ;;  %vm703_vm12 = vcmp.lt.s32.totalorder %v1089_v1, 5 }
  0x15   :  { %v690_v61 = vld [vmem:[#allocation2 + $0x34] sm:$0x1]  ;;  %v691_v62 = vld [vmem:[#allocation2 + $0x44] sm:$0x1]  ;;  %v696_v3 = vmax.f32 %v680_v49, %v688_v59  ;;  %v697_v4 = vmax.f32 %v681_v50, %v689_v60  ;;  %v311_v10 = vld [vmem:[#allocation2] sm:$0x1] }
  0x16   :  { %v692_v63 = vld [vmem:[#allocation2 + $0x54] sm:$0x1]  ;;  %v693_v0 = vld [vmem:[#allocation2 + $0x64] sm:$0x1]  ;;  %v698_v5 = vmax.f32 %v682_v53, %v690_v61  ;;  %v699_v7 = vmax.f32 %v683_v54, %v691_v62  ;;  %v312_v15 = vld [vmem:[#allocation2 + $0x10] sm:$0x1] }
  0x17   :  { %v694_v6 = vld [vmem:[#allocation2 + $0x74] sm:$0x1]  ;;  %v700_v8 = vmax.f32 %v684_v55, %v692_v63  ;;  %v701_v9 = vmax.f32 %v685_v57, %v693_v0  ;;  %v715_v12 = vrot.slane %v696_v3, 7  ;;  %v717_v13 = vrot.slane %v697_v4, 6  ;;  %v313_v19 = vld [vmem:[#allocation2 + $0x20] sm:$0x1] }
  0x18   :  { %v702_v11 = vmax.f32 %v686_v58, %v694_v6  ;;  %v719_v14 = vrot.slane %v698_v5, 5  ;;  %v721_v16 = vrot.slane %v699_v7, 4  ;;  %v314_v20 = vld [vmem:[#allocation2 + $0x30] sm:$0x1]  ;;  %v315_v25 = vld [vmem:[#allocation2 + $0x40] sm:$0x1] }
  0x19   :  { %v723_v17 = vrot.slane %v700_v8, 3  ;;  %v716_v21 = vsel %vm284_vm2, %v715_v12, %v695_v2  ;;  %v725_v22 = vrot.slane %v701_v9, 2  ;;  %v316_v26 = vld [vmem:[#allocation2 + $0x50] sm:$0x1]  ;;  %v317_v28 = vld [vmem:[#allocation2 + $0x60] sm:$0x1] }
  0x1a   :  { %v727_v23 = vrot.slane %v702_v11, 1  ;;  %v718_v27 = vsel %vm287_vm5, %v717_v13, %v716_v21  ;;  %v318_v29 = vld [vmem:[#allocation2 + $0x70] sm:$0x1]  ;;  %v319_v30 = vld [vmem:[#allocation2 + $0x1] sm:$0x1]  ;;  %vm465_vm15 = vcmp.ge.s32.totalorder %v1089_v1, 8 }
  0x1b   :  { %v720_v31 = vsel %vm290_vm6, %v719_v14, %v718_v27  ;;  %v320_v32 = vld [vmem:[#allocation2 + $0x11] sm:$0x1]  ;;  %v321_v33 = vld [vmem:[#allocation2 + $0x21] sm:$0x1]  ;;  %v327_v35 = vmax.f32 %v311_v10, %v319_v30  ;;  %v335_v48 = vld [vmem:[#allocation2 + $0x2] sm:$0x1] }
  0x1c   :  { %v322_v34 = vld [vmem:[#allocation2 + $0x31] sm:$0x1]  ;;  %v722_v36 = vsel %vm293_vm7, %v721_v16, %v720_v31  ;;  %v323_v37 = vld [vmem:[#allocation2 + $0x41] sm:$0x1]  ;;  %v328_v40 = vmax.f32 %v312_v15, %v320_v32  ;;  %v329_v41 = vmax.f32 %v313_v19, %v321_v33  ;;  %v336_v49 = vld [vmem:[#allocation2 + $0x12] sm:$0x1] }
  0x1d   :  { %v324_v38 = vld [vmem:[#allocation2 + $0x51] sm:$0x1]  ;;  %v325_v39 = vld [vmem:[#allocation2 + $0x61] sm:$0x1]  ;;  %v330_v42 = vmax.f32 %v314_v20, %v322_v34  ;;  %v724_v43 = vsel %vm296_vm8, %v723_v17, %v722_v36  ;;  %v331_v45 = vmax.f32 %v315_v25, %v323_v37  ;;  %v337_v52 = vld [vmem:[#allocation2 + $0x22] sm:$0x1]  ;;  %v343_v55 = vmax.f32 %v327_v35, %v335_v48 }
  0x1e   :  { %v326_v44 = vld [vmem:[#allocation2 + $0x71] sm:$0x1]  ;;  %v332_v46 = vmax.f32 %v316_v26, %v324_v38  ;;  %v333_v47 = vmax.f32 %v317_v28, %v325_v39  ;;  %v726_v50 = vsel %vm299_vm9, %v725_v22, %v724_v43  ;;  %v338_v53 = vld [vmem:[#allocation2 + $0x32] sm:$0x1]  ;;  %v339_v54 = vld [vmem:[#allocation2 + $0x42] sm:$0x1]  ;;  %v344_v56 = vmax.f32 %v328_v40, %v336_v49 }
  0x1f   :  { %v334_v51 = vmax.f32 %v318_v29, %v326_v44  ;;  %v728_v57 = vsel %vm302_vm10, %v727_v23, %v726_v50  ;;  %v340_v58 = vld [vmem:[#allocation2 + $0x52] sm:$0x1]  ;;  %v341_v59 = vld [vmem:[#allocation2 + $0x62] sm:$0x1]  ;;  %v345_v61 = vmax.f32 %v329_v41, %v337_v52  ;;  %v346_v62 = vmax.f32 %v330_v42, %v338_v53  ;;  %v351_v5 = vld [vmem:[#allocation2 + $0x3] sm:$0x1] }
  0x20   :  { %v342_v60 = vld [vmem:[#allocation2 + $0x72] sm:$0x1]  ;;  %v347_v63 = vmax.f32 %v331_v45, %v339_v54  ;;  %v741_v0 = vsel %vm1100_vm13, %v728_v57, -inf  ;;  %v751_v2 = vsel %vm1109_vm14, %v728_v57, -inf  ;;  %v730_v3 = vsel %vm703_vm12, %v728_v57, -inf  ;;  %vm1135_vm1 = vmand %vm465_vm15, %vm466_vm3 }
  0x21   :  { %v348_v4 = vmax.f32 %v332_v46, %v340_v58  ;;  %v742_v6 = vsel %vm305_vm11, %v741_v0, -inf  ;;  %v752_v7 = vsel %vm305_vm11, %v751_v2, -inf  ;;  %v731_v8 = vsel %vm305_vm11, %v730_v3, -inf  ;;  %v352_v10 = vld [vmem:[#allocation2 + $0x13] sm:$0x1] }
  0x22   :  { %v349_v9 = vmax.f32 %v333_v47, %v341_v59  ;;  %743 = vmax.xlane.f32.xlu0 %v742_v6  ;;  %753 = vmax.xlane.f32.xlu1 %v752_v7  ;;  %v350_v11 = vmax.f32 %v334_v51, %v342_v60  ;;  %v353_v12 = vld [vmem:[#allocation2 + $0x23] sm:$0x1]  ;;  %v354_v13 = vld [vmem:[#allocation2 + $0x33] sm:$0x1]  ;;  %v359_v15 = vmax.f32 %v343_v55, %v351_v5  ;;  %v367_v28 = vld [vmem:[#allocation2 + $0x4] sm:$0x1] }
  0x23   :  { %v355_v14 = vld [vmem:[#allocation2 + $0x43] sm:$0x1]  ;;  %v360_v16 = vmax.f32 %v344_v56, %v352_v10  ;;  %732 = vmax.xlane.f32.xlu2 %v731_v8  ;;  %v356_v17 = vld [vmem:[#allocation2 + $0x53] sm:$0x1]  ;;  %v361_v21 = vmax.f32 %v345_v61, %v353_v12  ;;  %v362_v22 = vmax.f32 %v346_v62, %v354_v13  ;;  %v368_v29 = vld [vmem:[#allocation2 + $0x14] sm:$0x1] }
  0x24   :  { %v357_v19 = vld [vmem:[#allocation2 + $0x63] sm:$0x1]  ;;  %v358_v20 = vld [vmem:[#allocation2 + $0x73] sm:$0x1]  ;;  %v363_v23 = vmax.f32 %v347_v63, %v355_v14  ;;  %v364_v25 = vmax.f32 %v348_v4, %v356_v17  ;;  %v369_v30 = vld [vmem:[#allocation2 + $0x24] sm:$0x1]  ;;  %v375_v34 = vmax.f32 %v359_v15, %v367_v28 }
  0x25   :  { %v365_v26 = vmax.f32 %v349_v9, %v357_v19  ;;  %v366_v27 = vmax.f32 %v350_v11, %v358_v20  ;;  %v370_v31 = vld [vmem:[#allocation2 + $0x34] sm:$0x1]  ;;  %v371_v32 = vld [vmem:[#allocation2 + $0x44] sm:$0x1]  ;;  %v376_v35 = vmax.f32 %v360_v16, %v368_v29  ;;  %v377_v36 = vmax.f32 %v361_v21, %v369_v30  ;;  %v383_v42 = vld [vmem:[#allocation2 + $0x5] sm:$0x1] }
  0x26   :  { %v372_v33 = vld [vmem:[#allocation2 + $0x54] sm:$0x1]  ;;  %v373_v37 = vld [vmem:[#allocation2 + $0x64] sm:$0x1]  ;;  %v378_v39 = vmax.f32 %v362_v22, %v370_v31  ;;  %v379_v40 = vmax.f32 %v363_v23, %v371_v32  ;;  %v384_v45 = vld [vmem:[#allocation2 + $0x15] sm:$0x1]  ;;  %v391_v48 = vmax.f32 %v375_v34, %v383_v42 }
  0x27   :  { %v374_v38 = vld [vmem:[#allocation2 + $0x74] sm:$0x1]  ;;  %v380_v41 = vmax.f32 %v364_v25, %v372_v33  ;;  %v381_v43 = vmax.f32 %v365_v26, %v373_v37  ;;  %v385_v46 = vld [vmem:[#allocation2 + $0x25] sm:$0x1]  ;;  %v386_v47 = vld [vmem:[#allocation2 + $0x35] sm:$0x1]  ;;  %v392_v52 = vmax.f32 %v376_v35, %v384_v45 }
  0x28   :  { %v382_v44 = vmax.f32 %v366_v27, %v374_v38  ;;  %v387_v49 = vld [vmem:[#allocation2 + $0x45] sm:$0x1]  ;;  %v388_v50 = vld [vmem:[#allocation2 + $0x55] sm:$0x1]  ;;  %v393_v53 = vmax.f32 %v377_v36, %v385_v46  ;;  %v394_v54 = vmax.f32 %v378_v39, %v386_v47  ;;  %v399_v59 = vld [vmem:[#allocation2 + $0x6] sm:$0x1] }
  0x29   :  { %v389_v51 = vld [vmem:[#allocation2 + $0x65] sm:$0x1]  ;;  %v390_v55 = vld [vmem:[#allocation2 + $0x75] sm:$0x1]  ;;  %v395_v56 = vmax.f32 %v379_v40, %v387_v49  ;;  %v396_v57 = vmax.f32 %v380_v41, %v388_v50  ;;  %v400_v60 = vld [vmem:[#allocation2 + $0x16] sm:$0x1]  ;;  %v407_v2 = vmax.f32 %v391_v48, %v399_v59 }
  0x2a   :  { %v397_v58 = vmax.f32 %v381_v43, %v389_v51  ;;  %v398_v61 = vmax.f32 %v382_v44, %v390_v55  ;;  %v401_v62 = vld [vmem:[#allocation2 + $0x26] sm:$0x1]  ;;  %v402_v63 = vld [vmem:[#allocation2 + $0x36] sm:$0x1]  ;;  %v408_v3 = vmax.f32 %v392_v52, %v400_v60  ;;  %v415_v13 = vld [vmem:[#allocation2 + $0x7] sm:$0x1] }
  0x2b   :  { %v403_v0 = vld [vmem:[#allocation2 + $0x46] sm:$0x1]  ;;  %v404_v4 = vld [vmem:[#allocation2 + $0x56] sm:$0x1]  ;;  %v409_v7 = vmax.f32 %v393_v53, %v401_v62  ;;  %v410_v8 = vmax.f32 %v394_v54, %v402_v63  ;;  %v416_v14 = vld [vmem:[#allocation2 + $0x17] sm:$0x1]  ;;  %v423_v20 = vmax.f32 %v407_v2, %v415_v13 }
  0x2c   :  { %v405_v5 = vld [vmem:[#allocation2 + $0x66] sm:$0x1]  ;;  %v406_v6 = vld [vmem:[#allocation2 + $0x76] sm:$0x1]  ;;  %v411_v9 = vmax.f32 %v395_v56, %v403_v0  ;;  %v412_v10 = vmax.f32 %v396_v57, %v404_v4  ;;  %v417_v15 = vld [vmem:[#allocation2 + $0x27] sm:$0x1]  ;;  %v424_v21 = vmax.f32 %v408_v3, %v416_v14 }
  0x2d   :  { %v413_v11 = vmax.f32 %v397_v58, %v405_v5  ;;  %v414_v12 = vmax.f32 %v398_v61, %v406_v6  ;;  %v418_v16 = vld [vmem:[#allocation2 + $0x37] sm:$0x1]  ;;  %v419_v17 = vld [vmem:[#allocation2 + $0x47] sm:$0x1]  ;;  %v425_v22 = vmax.f32 %v409_v7, %v417_v15  ;;  %v757_v29 = vld [vmem:[#allocation2 + $0x5] sm:$0x1] }
  0x2e   :  { %v420_v19 = vld [vmem:[#allocation2 + $0x57] sm:$0x1]  ;;  %v421_v23 = vld [vmem:[#allocation2 + $0x67] sm:$0x1]  ;;  %v426_v26 = vmax.f32 %v410_v8, %v418_v16  ;;  %v427_v27 = vmax.f32 %v411_v9, %v419_v17  ;;  %v444_v32 = vrot.slane %v424_v21, 7  ;;  %vm432_vm0 = vcmp.lt.s32.totalorder %v1089_v1, 8 }
  0x2f   :  { %v422_v25 = vld [vmem:[#allocation2 + $0x77] sm:$0x1]  ;;  %v428_v28 = vmax.f32 %v412_v10, %v420_v19  ;;  %v429_v30 = vmax.f32 %v413_v11, %v421_v23  ;;  %v446_v33 = vrot.slane %v425_v22, 6  ;;  %v758_v34 = vld [vmem:[#allocation2 + $0x15] sm:$0x1]  ;;  %vm463_vm3 = vcmask 15368  }
  0x30   :  { %v430_v31 = vmax.f32 %v414_v12, %v422_v25  ;;  %v759_v35 = vld [vmem:[#allocation2 + $0x25] sm:$0x1]  ;;  %v448_v36 = vrot.slane %v426_v26, 5  ;;  %v450_v37 = vrot.slane %v427_v27, 4  ;;  %v760_v39 = vld [vmem:[#allocation2 + $0x35] sm:$0x1]  ;;  %v445_v40 = vsel %vm284_vm2, %v444_v32, %v423_v20 }
  0x31   :  { %v452_v38 = vrot.slane %v428_v28, 3  ;;  %v454_v41 = vrot.slane %v429_v30, 2  ;;  %v761_v44 = vld [vmem:[#allocation2 + $0x45] sm:$0x1]  ;;  %v762_v45 = vld [vmem:[#allocation2 + $0x55] sm:$0x1]  ;;  %v447_v46 = vsel %vm287_vm5, %v446_v33, %v445_v40 }
  0x32   :  { %v456_v42 = vrot.slane %v430_v31, 1  ;;  %v763_v47 = vld [vmem:[#allocation2 + $0x65] sm:$0x1]  ;;  %v764_v48 = vld [vmem:[#allocation2 + $0x75] sm:$0x1]  ;;  %v449_v50 = vsel %vm290_vm6, %v448_v36, %v447_v46  ;;  %vm474_vm4 = vcmask 23568  }
  0x33   :  { %v765_v49 = vld [vmem:[#allocation2 + $0x6] sm:$0x1]  ;;  %v766_v51 = vld [vmem:[#allocation2 + $0x16] sm:$0x1]  ;;  %v451_v55 = vsel %vm293_vm7, %v450_v37, %v449_v50  ;;  %v781_v4 = vld [vmem:[#allocation2 + $0x7] sm:$0x1] }
  0x34   :  { %v767_v52 = vld [vmem:[#allocation2 + $0x26] sm:$0x1]  ;;  %v768_v53 = vld [vmem:[#allocation2 + $0x36] sm:$0x1]  ;;  %v773_v54 = vmax.f32 %v757_v29, %v765_v49  ;;  %v774_v59 = vmax.f32 %v758_v34, %v766_v51  ;;  %v453_v62 = vsel %vm296_vm8, %v452_v38, %v451_v55  ;;  %v782_v5 = vld [vmem:[#allocation2 + $0x17] sm:$0x1] }
  0x35   :  { %v769_v56 = vld [vmem:[#allocation2 + $0x46] sm:$0x1]  ;;  %v770_v57 = vld [vmem:[#allocation2 + $0x56] sm:$0x1]  ;;  %v775_v60 = vmax.f32 %v759_v35, %v767_v52  ;;  %v776_v61 = vmax.f32 %v760_v39, %v768_v53  ;;  %v455_v6 = vsel %vm299_vm9, %v454_v41, %v453_v62  ;;  %v783_v8 = vld [vmem:[#allocation2 + $0x27] sm:$0x1] }
  0x36   :  { %v771_v58 = vld [vmem:[#allocation2 + $0x66] sm:$0x1]  ;;  %v772_v63 = vld [vmem:[#allocation2 + $0x76] sm:$0x1]  ;;  %v777_v0 = vmax.f32 %v761_v44, %v769_v56  ;;  %v778_v2 = vmax.f32 %v762_v45, %v770_v57  ;;  %v784_v9 = vld [vmem:[#allocation2 + $0x37] sm:$0x1]  ;;  %v789_v11 = vmax.f32 %v773_v54, %v781_v4  ;;  %v790_v12 = vmax.f32 %v774_v59, %v782_v5 }
  0x37   :  { %v779_v3 = vmax.f32 %v763_v47, %v771_v58  ;;  %v780_v7 = vmax.f32 %v764_v48, %v772_v63  ;;  %v785_v10 = vld [vmem:[#allocation2 + $0x47] sm:$0x1]  ;;  %v457_v13 = vsel %vm302_vm10, %v456_v42, %v455_v6  ;;  %v786_v14 = vld [vmem:[#allocation2 + $0x57] sm:$0x1]  ;;  %v791_v17 = vmax.f32 %v775_v60, %v783_v8  ;;  %v797_v26 = vld [vmem:[#allocation2 + $0x8] sm:$0x1] }
  0x38   :  { %v787_v15 = vld [vmem:[#allocation2 + $0x67] sm:$0x1]  ;;  %v788_v16 = vld [vmem:[#allocation2 + $0x77] sm:$0x1]  ;;  %v792_v19 = vmax.f32 %v776_v61, %v784_v9  ;;  %v793_v20 = vmax.f32 %v777_v0, %v785_v10  ;;  %v459_v21 = vsel %vm432_vm0, %v457_v13, -inf  ;;  %v470_v22 = vsel %vm1135_vm1, %v457_v13, -inf }
  0x39   :  { %v794_v23 = vmax.f32 %v778_v2, %v786_v14  ;;  %v795_v25 = vmax.f32 %v779_v3, %v787_v15  ;;  %v798_v27 = vld [vmem:[#allocation2 + $0x18] sm:$0x1]  ;;  %v460_v28 = vsel %vm305_vm11, %v459_v21, -inf  ;;  %v471_v29 = vsel %vm305_vm11, %v470_v22, -inf  ;;  %v799_v31 = vld [vmem:[#allocation2 + $0x28] sm:$0x1] }
  0x3a   :  { %v796_v30 = vmax.f32 %v780_v7, %v788_v16  ;;  %v800_v32 = vld [vmem:[#allocation2 + $0x38] sm:$0x1]  ;;  %v805_v33 = vmax.f32 %v789_v11, %v797_v26  ;;  %461 = vmax.xlane.f32.xlu0 %v460_v28  ;;  %472 = vmax.xlane.f32.xlu1 %v471_v29  ;;  %v801_v34 = vld [vmem:[#allocation2 + $0x48] sm:$0x1]  ;;  %v806_v37 = vmax.f32 %v790_v12, %v798_v27  ;;  %v813_v45 = vld [vmem:[#allocation2 + $0x9] sm:$0x1] }
  0x3b   :  { %v802_v35 = vld [vmem:[#allocation2 + $0x58] sm:$0x1]  ;;  %v803_v36 = vld [vmem:[#allocation2 + $0x68] sm:$0x1]  ;;  %v807_v38 = vmax.f32 %v791_v17, %v799_v31  ;;  %v808_v39 = vmax.f32 %v792_v19, %v800_v32  ;;  %v809_v41 = vmax.f32 %v793_v20, %v801_v34  ;;  %v814_v46 = vld [vmem:[#allocation2 + $0x19] sm:$0x1] }
  0x3c   :  { %v804_v40 = vld [vmem:[#allocation2 + $0x78] sm:$0x1]  ;;  %v810_v42 = vmax.f32 %v794_v23, %v802_v35  ;;  %v811_v44 = vmax.f32 %v795_v25, %v803_v36  ;;  %v815_v48 = vld [vmem:[#allocation2 + $0x29] sm:$0x1]  ;;  %v816_v49 = vld [vmem:[#allocation2 + $0x39] sm:$0x1]  ;;  %v821_v51 = vmax.f32 %v805_v33, %v813_v45  ;;  %v822_v52 = vmax.f32 %v806_v37, %v814_v46 }
  0x3d   :  { %v812_v47 = vmax.f32 %v796_v30, %v804_v40  ;;  %v817_v50 = vld [vmem:[#allocation2 + $0x49] sm:$0x1]  ;;  %v818_v53 = vld [vmem:[#allocation2 + $0x59] sm:$0x1]  ;;  %v823_v56 = vmax.f32 %v807_v38, %v815_v48  ;;  %v824_v57 = vmax.f32 %v808_v39, %v816_v49  ;;  %v829_v62 = vld [vmem:[#allocation2 + $0xa] sm:$0x1] }
  0x3e   :  { %v819_v54 = vld [vmem:[#allocation2 + $0x69] sm:$0x1]  ;;  %v820_v55 = vld [vmem:[#allocation2 + $0x79] sm:$0x1]  ;;  %v825_v58 = vmax.f32 %v809_v41, %v817_v50  ;;  %v826_v59 = vmax.f32 %v810_v42, %v818_v53  ;;  %v830_v63 = vld [vmem:[#allocation2 + $0x1a] sm:$0x1]  ;;  %v837_v5 = vmax.f32 %v821_v51, %v829_v62 }
  0x3f   :  { %v827_v60 = vmax.f32 %v811_v44, %v819_v54  ;;  %v828_v61 = vmax.f32 %v812_v47, %v820_v55  ;;  %v831_v0 = vld [vmem:[#allocation2 + $0x2a] sm:$0x1]  ;;  %v832_v2 = vld [vmem:[#allocation2 + $0x3a] sm:$0x1]  ;;  %v838_v6 = vmax.f32 %v822_v52, %v830_v63  ;;  %v27_v13 = vld [vmem:[#allocation2] sm:$0x1] }
  0x40   :  { %v833_v3 = vld [vmem:[#allocation2 + $0x4a] sm:$0x1]  ;;  %v834_v4 = vld [vmem:[#allocation2 + $0x5a] sm:$0x1]  ;;  %v839_v7 = vmax.f32 %v823_v56, %v831_v0  ;;  %v840_v10 = vmax.f32 %v824_v57, %v832_v2  ;;  %v28_v19 = vld [vmem:[#allocation2 + $0x10] sm:$0x1] }
  0x41   :  { %v835_v8 = vld [vmem:[#allocation2 + $0x6a] sm:$0x1]  ;;  %v836_v9 = vld [vmem:[#allocation2 + $0x7a] sm:$0x1]  ;;  %v841_v11 = vmax.f32 %v825_v58, %v833_v3  ;;  %v842_v12 = vmax.f32 %v826_v59, %v834_v4  ;;  %v853_v16 = vrot.slane %v838_v6, 7  ;;  %vm997_vm15 = vcmask 113768  }
  0x42   :  { %v843_v14 = vmax.f32 %v827_v60, %v835_v8  ;;  %v844_v15 = vmax.f32 %v828_v61, %v836_v9  ;;  %v855_v17 = vrot.slane %v839_v7, 6  ;;  %v29_v20 = vld [vmem:[#allocation2 + $0x20] sm:$0x1]  ;;  %v857_v21 = vrot.slane %v840_v10, 5  ;;  %v30_v25 = vld [vmem:[#allocation2 + $0x30] sm:$0x1] }
  0x43   :  { %v859_v22 = vrot.slane %v841_v11, 4  ;;  %v861_v23 = vrot.slane %v842_v12, 3  ;;  %v854_v26 = vsel %vm284_vm2, %v853_v16, %v837_v5  ;;  %v31_v29 = vld [vmem:[#allocation2 + $0x40] sm:$0x1]  ;;  %v32_v30 = vld [vmem:[#allocation2 + $0x50] sm:$0x1] }
  0x44   :  { %v863_v27 = vrot.slane %v843_v14, 2  ;;  %v865_v28 = vrot.slane %v844_v15, 1  ;;  %v856_v31 = vsel %vm287_vm5, %v855_v17, %v854_v26  ;;  %v33_v32 = vld [vmem:[#allocation2 + $0x60] sm:$0x1]  ;;  %v34_v33 = vld [vmem:[#allocation2 + $0x70] sm:$0x1] }
  0x45   :  { %v35_v34 = vld [vmem:[#allocation2 + $0x1] sm:$0x1]  ;;  %v858_v35 = vsel %vm290_vm6, %v857_v21, %v856_v31  ;;  %v36_v36 = vld [vmem:[#allocation2 + $0x11] sm:$0x1]  ;;  %v51_v53 = vld [vmem:[#allocation2 + $0x2] sm:$0x1] }
  0x46   :  { %v37_v37 = vld [vmem:[#allocation2 + $0x21] sm:$0x1]  ;;  %v38_v38 = vld [vmem:[#allocation2 + $0x31] sm:$0x1]  ;;  %v43_v39 = vmax.f32 %v27_v13, %v35_v34  ;;  %v860_v40 = vsel %vm293_vm7, %v859_v22, %v858_v35  ;;  %v44_v45 = vmax.f32 %v28_v19, %v36_v36  ;;  %v52_v54 = vld [vmem:[#allocation2 + $0x12] sm:$0x1] }
  0x47   :  { %v39_v41 = vld [vmem:[#allocation2 + $0x41] sm:$0x1]  ;;  %v40_v42 = vld [vmem:[#allocation2 + $0x51] sm:$0x1]  ;;  %v45_v46 = vmax.f32 %v29_v20, %v37_v37  ;;  %v46_v47 = vmax.f32 %v30_v25, %v38_v38  ;;  %v862_v48 = vsel %vm296_vm8, %v861_v23, %v860_v40  ;;  %v53_v57 = vld [vmem:[#allocation2 + $0x22] sm:$0x1] }
  0x48   :  { %v41_v44 = vld [vmem:[#allocation2 + $0x61] sm:$0x1]  ;;  %v42_v49 = vld [vmem:[#allocation2 + $0x71] sm:$0x1]  ;;  %v47_v50 = vmax.f32 %v31_v29, %v39_v41  ;;  %v48_v51 = vmax.f32 %v32_v30, %v40_v42  ;;  %v864_v55 = vsel %vm299_vm9, %v863_v27, %v862_v48  ;;  %v54_v58 = vld [vmem:[#allocation2 + $0x32] sm:$0x1]  ;;  %v59_v60 = vmax.f32 %v43_v39, %v51_v53 }
  0x49   :  { %v49_v52 = vmax.f32 %v33_v32, %v41_v44  ;;  %v50_v56 = vmax.f32 %v34_v33, %v42_v49  ;;  %v55_v59 = vld [vmem:[#allocation2 + $0x42] sm:$0x1]  ;;  %v60_v61 = vmax.f32 %v44_v45, %v52_v54  ;;  %v1158_v62 = vsel %vm302_vm10, %v865_v28, %v864_v55  ;;  %v56_v63 = vld [vmem:[#allocation2 + $0x52] sm:$0x1]  ;;  %v67_v10 = vld [vmem:[#allocation2 + $0x3] sm:$0x1] }
  0x4a   :  { %v57_v0 = vld [vmem:[#allocation2 + $0x62] sm:$0x1]  ;;  %v58_v2 = vld [vmem:[#allocation2 + $0x72] sm:$0x1]  ;;  %v61_v3 = vmax.f32 %v45_v46, %v53_v57  ;;  %v62_v4 = vmax.f32 %v46_v47, %v54_v58  ;;  %v63_v5 = vmax.f32 %v47_v50, %v55_v59  ;;  %v868_v6 = vsel %vm703_vm12, %v1158_v62, -inf }
  0x4b   :  { %v64_v7 = vmax.f32 %v48_v51, %v56_v63  ;;  %v65_v8 = vmax.f32 %v49_v52, %v57_v0  ;;  %v66_v9 = vmax.f32 %v50_v56, %v58_v2  ;;  %v68_v11 = vld [vmem:[#allocation2 + $0x13] sm:$0x1]  ;;  %v869_v12 = vsel %vm305_vm11, %v868_v6, -inf  ;;  %v69_v13 = vld [vmem:[#allocation2 + $0x23] sm:$0x1] }
  0x4c   :  { %v70_v14 = vld [vmem:[#allocation2 + $0x33] sm:$0x1]  ;;  %v75_v15 = vmax.f32 %v59_v60, %v67_v10  ;;  %v76_v16 = vmax.f32 %v60_v61, %v68_v11  ;;  %870 = vmax.xlane.f32.xlu2 %v869_v12  ;;  %v71_v17 = vld [vmem:[#allocation2 + $0x43] sm:$0x1]  ;;  %v77_v21 = vmax.f32 %v61_v3, %v69_v13  ;;  %v83_v28 = vld [vmem:[#allocation2 + $0x4] sm:$0x1] }
  0x4d   :  { %v72_v19 = vld [vmem:[#allocation2 + $0x53] sm:$0x1]  ;;  %v73_v20 = vld [vmem:[#allocation2 + $0x63] sm:$0x1]  ;;  %v78_v22 = vmax.f32 %v62_v4, %v70_v14  ;;  %v79_v25 = vmax.f32 %v63_v5, %v71_v17  ;;  %v84_v29 = vld [vmem:[#allocation2 + $0x14] sm:$0x1] }
  0x4e   :  { %v74_v23 = vld [vmem:[#allocation2 + $0x73] sm:$0x1]  ;;  %v80_v26 = vmax.f32 %v64_v7, %v72_v19  ;;  %v81_v27 = vmax.f32 %v65_v8, %v73_v20  ;;  %v85_v31 = vld [vmem:[#allocation2 + $0x24] sm:$0x1]  ;;  %v86_v32 = vld [vmem:[#allocation2 + $0x34] sm:$0x1]  ;;  %v91_v34 = vmax.f32 %v75_v15, %v83_v28  ;;  %v92_v35 = vmax.f32 %v76_v16, %v84_v29 }
  0x4f   :  { %v82_v30 = vmax.f32 %v66_v9, %v74_v23  ;;  %v87_v33 = vld [vmem:[#allocation2 + $0x44] sm:$0x1]  ;;  %v88_v36 = vld [vmem:[#allocation2 + $0x54] sm:$0x1]  ;;  %v93_v39 = vmax.f32 %v77_v21, %v85_v31  ;;  %v94_v40 = vmax.f32 %v78_v22, %v86_v32  ;;  %v99_v46 = vld [vmem:[#allocation2 + $0x5] sm:$0x1] }
  0x50   :  { %v89_v37 = vld [vmem:[#allocation2 + $0x64] sm:$0x1]  ;;  %v90_v38 = vld [vmem:[#allocation2 + $0x74] sm:$0x1]  ;;  %v95_v41 = vmax.f32 %v79_v25, %v87_v33  ;;  %v96_v42 = vmax.f32 %v80_v26, %v88_v36  ;;  %v100_v47 = vld [vmem:[#allocation2 + $0x15] sm:$0x1]  ;;  %v107_v52 = vmax.f32 %v91_v34, %v99_v46 }
  0x51   :  { %v97_v44 = vmax.f32 %v81_v27, %v89_v37  ;;  %v98_v45 = vmax.f32 %v82_v30, %v90_v38  ;;  %v101_v48 = vld [vmem:[#allocation2 + $0x25] sm:$0x1]  ;;  %v102_v49 = vld [vmem:[#allocation2 + $0x35] sm:$0x1]  ;;  %v108_v53 = vmax.f32 %v92_v35, %v100_v47  ;;  %v115_v60 = vld [vmem:[#allocation2 + $0x6] sm:$0x1] }
  0x52   :  { %v103_v50 = vld [vmem:[#allocation2 + $0x45] sm:$0x1]  ;;  %v104_v51 = vld [vmem:[#allocation2 + $0x55] sm:$0x1]  ;;  %v109_v54 = vmax.f32 %v93_v39, %v101_v48  ;;  %v110_v57 = vmax.f32 %v94_v40, %v102_v49  ;;  %v116_v0 = vld [vmem:[#allocation2 + $0x16] sm:$0x1]  ;;  %v123_v4 = vmax.f32 %v107_v52, %v115_v60 }
  0x53   :  { %v105_v55 = vld [vmem:[#allocation2 + $0x65] sm:$0x1]  ;;  %v106_v56 = vld [vmem:[#allocation2 + $0x75] sm:$0x1]  ;;  %v111_v58 = vmax.f32 %v95_v41, %v103_v50  ;;  %v112_v59 = vmax.f32 %v96_v42, %v104_v51  ;;  %v117_v2 = vld [vmem:[#allocation2 + $0x26] sm:$0x1]  ;;  %v124_v8 = vmax.f32 %v108_v53, %v116_v0 }
  0x54   :  { %v113_v61 = vmax.f32 %v97_v44, %v105_v55  ;;  %v114_v63 = vmax.f32 %v98_v45, %v106_v56  ;;  %v118_v3 = vld [vmem:[#allocation2 + $0x36] sm:$0x1]  ;;  %v119_v5 = vld [vmem:[#allocation2 + $0x46] sm:$0x1]  ;;  %v125_v9 = vmax.f32 %v109_v54, %v117_v2  ;;  %v131_v15 = vld [vmem:[#allocation2 + $0x7] sm:$0x1] }
  0x55   :  { %v120_v6 = vld [vmem:[#allocation2 + $0x56] sm:$0x1]  ;;  %v121_v7 = vld [vmem:[#allocation2 + $0x66] sm:$0x1]  ;;  %v126_v10 = vmax.f32 %v110_v57, %v118_v3  ;;  %v127_v12 = vmax.f32 %v111_v58, %v119_v5  ;;  %v132_v16 = vld [vmem:[#allocation2 + $0x17] sm:$0x1]  ;;  %v139_v22 = vmax.f32 %v123_v4, %v131_v15 }
  0x56   :  { %v122_v11 = vld [vmem:[#allocation2 + $0x76] sm:$0x1]  ;;  %v128_v13 = vmax.f32 %v112_v59, %v120_v6  ;;  %v129_v14 = vmax.f32 %v113_v61, %v121_v7  ;;  %v133_v19 = vld [vmem:[#allocation2 + $0x27] sm:$0x1]  ;;  %v134_v20 = vld [vmem:[#allocation2 + $0x37] sm:$0x1]  ;;  %v140_v23 = vmax.f32 %v124_v8, %v132_v16 }
  0x57   :  { %v130_v17 = vmax.f32 %v114_v63, %v122_v11  ;;  %v135_v21 = vld [vmem:[#allocation2 + $0x47] sm:$0x1]  ;;  %v136_v25 = vld [vmem:[#allocation2 + $0x57] sm:$0x1]  ;;  %v141_v28 = vmax.f32 %v125_v9, %v133_v19  ;;  %v142_v29 = vmax.f32 %v126_v10, %v134_v20  ;;  %v147_v34 = vld [vmem:[#allocation2 + $0x8] sm:$0x1] }
  0x58   :  { %v137_v26 = vld [vmem:[#allocation2 + $0x67] sm:$0x1]  ;;  %v138_v27 = vld [vmem:[#allocation2 + $0x77] sm:$0x1]  ;;  %v143_v30 = vmax.f32 %v127_v12, %v135_v21  ;;  %v144_v31 = vmax.f32 %v128_v13, %v136_v25  ;;  %v148_v35 = vld [vmem:[#allocation2 + $0x18] sm:$0x1]  ;;  %v155_v40 = vmax.f32 %v139_v22, %v147_v34 }
  0x59   :  { %v145_v32 = vmax.f32 %v129_v14, %v137_v26  ;;  %v146_v33 = vmax.f32 %v130_v17, %v138_v27  ;;  %v149_v36 = vld [vmem:[#allocation2 + $0x28] sm:$0x1]  ;;  %v150_v37 = vld [vmem:[#allocation2 + $0x38] sm:$0x1]  ;;  %v156_v41 = vmax.f32 %v140_v23, %v148_v35  ;;  %v163_v49 = vld [vmem:[#allocation2 + $0x9] sm:$0x1] }
  0x5a   :  { %v151_v38 = vld [vmem:[#allocation2 + $0x48] sm:$0x1]  ;;  %v152_v39 = vld [vmem:[#allocation2 + $0x58] sm:$0x1]  ;;  %v157_v42 = vmax.f32 %v141_v28, %v149_v36  ;;  %v158_v46 = vmax.f32 %v142_v29, %v150_v37  ;;  %v164_v52 = vld [vmem:[#allocation2 + $0x19] sm:$0x1]  ;;  %v171_v55 = vmax.f32 %v155_v40, %v163_v49 }
  0x5b   :  { %v153_v44 = vld [vmem:[#allocation2 + $0x68] sm:$0x1]  ;;  %v154_v45 = vld [vmem:[#allocation2 + $0x78] sm:$0x1]  ;;  %v159_v47 = vmax.f32 %v143_v30, %v151_v38  ;;  %v160_v48 = vmax.f32 %v144_v31, %v152_v39  ;;  %v165_v53 = vld [vmem:[#allocation2 + $0x29] sm:$0x1]  ;;  %v172_v59 = vmax.f32 %v156_v41, %v164_v52 }
  0x5c   :  { %v161_v50 = vmax.f32 %v145_v32, %v153_v44  ;;  %v162_v51 = vmax.f32 %v146_v33, %v154_v45  ;;  %v166_v54 = vld [vmem:[#allocation2 + $0x39] sm:$0x1]  ;;  %v167_v56 = vld [vmem:[#allocation2 + $0x49] sm:$0x1]  ;;  %v173_v60 = vmax.f32 %v157_v42, %v165_v53  ;;  %v179_v4 = vld [vmem:[#allocation2 + $0xa] sm:$0x1] }
  0x5d   :  { %v168_v57 = vld [vmem:[#allocation2 + $0x59] sm:$0x1]  ;;  %v169_v58 = vld [vmem:[#allocation2 + $0x69] sm:$0x1]  ;;  %v174_v61 = vmax.f32 %v158_v46, %v166_v54  ;;  %v175_v0 = vmax.f32 %v159_v47, %v167_v56  ;;  %v180_v5 = vld [vmem:[#allocation2 + $0x1a] sm:$0x1]  ;;  %v187_v10 = vmax.f32 %v171_v55, %v179_v4 }
  0x5e   :  { %v170_v63 = vld [vmem:[#allocation2 + $0x79] sm:$0x1]  ;;  %v176_v2 = vmax.f32 %v160_v48, %v168_v57  ;;  %v177_v3 = vmax.f32 %v161_v50, %v169_v58  ;;  %v181_v7 = vld [vmem:[#allocation2 + $0x2a] sm:$0x1]  ;;  %v182_v8 = vld [vmem:[#allocation2 + $0x3a] sm:$0x1]  ;;  %v188_v11 = vmax.f32 %v172_v59, %v180_v5 }
  0x5f   :  { %v178_v6 = vmax.f32 %v162_v51, %v170_v63  ;;  %v183_v9 = vld [vmem:[#allocation2 + $0x4a] sm:$0x1]  ;;  %v184_v12 = vld [vmem:[#allocation2 + $0x5a] sm:$0x1]  ;;  %v189_v15 = vmax.f32 %v173_v60, %v181_v7  ;;  %v190_v16 = vmax.f32 %v174_v61, %v182_v8  ;;  %v195_v22 = vld [vmem:[#allocation2 + $0xb] sm:$0x1] }
  0x60   :  { %v185_v13 = vld [vmem:[#allocation2 + $0x6a] sm:$0x1]  ;;  %v186_v14 = vld [vmem:[#allocation2 + $0x7a] sm:$0x1]  ;;  %v191_v17 = vmax.f32 %v175_v0, %v183_v9  ;;  %v192_v19 = vmax.f32 %v176_v2, %v184_v12  ;;  %v196_v23 = vld [vmem:[#allocation2 + $0x1b] sm:$0x1]  ;;  %v203_v29 = vmax.f32 %v187_v10, %v195_v22 }
  0x61   :  { %v193_v20 = vmax.f32 %v177_v3, %v185_v13  ;;  %v194_v21 = vmax.f32 %v178_v6, %v186_v14  ;;  %v197_v25 = vld [vmem:[#allocation2 + $0x2b] sm:$0x1]  ;;  %v198_v26 = vld [vmem:[#allocation2 + $0x3b] sm:$0x1]  ;;  %v204_v30 = vmax.f32 %v188_v11, %v196_v23  ;;  %v211_v37 = vld [vmem:[#allocation2 + $0xc] sm:$0x1] }
  0x62   :  { %v199_v27 = vld [vmem:[#allocation2 + $0x4b] sm:$0x1]  ;;  %v200_v28 = vld [vmem:[#allocation2 + $0x5b] sm:$0x1]  ;;  %v205_v31 = vmax.f32 %v189_v15, %v197_v25  ;;  %v206_v34 = vmax.f32 %v190_v16, %v198_v26  ;;  %v212_v40 = vld [vmem:[#allocation2 + $0x1c] sm:$0x1]  ;;  %v219_v44 = vmax.f32 %v203_v29, %v211_v37 }
  0x63   :  { %v201_v32 = vld [vmem:[#allocation2 + $0x6b] sm:$0x1]  ;;  %v202_v33 = vld [vmem:[#allocation2 + $0x7b] sm:$0x1]  ;;  %v207_v35 = vmax.f32 %v191_v17, %v199_v27  ;;  %v208_v36 = vmax.f32 %v192_v19, %v200_v28  ;;  %v213_v41 = vld [vmem:[#allocation2 + $0x2c] sm:$0x1]  ;;  %v220_v48 = vmax.f32 %v204_v30, %v212_v40 }
  0x64   :  { %v209_v38 = vmax.f32 %v193_v20, %v201_v32  ;;  %v210_v39 = vmax.f32 %v194_v21, %v202_v33  ;;  %v214_v42 = vld [vmem:[#allocation2 + $0x3c] sm:$0x1]  ;;  %v215_v45 = vld [vmem:[#allocation2 + $0x4c] sm:$0x1]  ;;  %v221_v49 = vmax.f32 %v205_v31, %v213_v41  ;;  %v227_v55 = vld [vmem:[#allocation2 + $0xd] sm:$0x1] }
  0x65   :  { %v216_v46 = vld [vmem:[#allocation2 + $0x5c] sm:$0x1]  ;;  %v217_v47 = vld [vmem:[#allocation2 + $0x6c] sm:$0x1]  ;;  %v222_v50 = vmax.f32 %v206_v34, %v214_v42  ;;  %v223_v52 = vmax.f32 %v207_v35, %v215_v45  ;;  %v228_v56 = vld [vmem:[#allocation2 + $0x1d] sm:$0x1]  ;;  %v235_v61 = vmax.f32 %v219_v44, %v227_v55 }
  0x66   :  { %v218_v51 = vld [vmem:[#allocation2 + $0x7c] sm:$0x1]  ;;  %v224_v53 = vmax.f32 %v208_v36, %v216_v46  ;;  %v225_v54 = vmax.f32 %v209_v38, %v217_v47  ;;  %v229_v58 = vld [vmem:[#allocation2 + $0x2d] sm:$0x1]  ;;  %v230_v59 = vld [vmem:[#allocation2 + $0x3d] sm:$0x1]  ;;  %v236_v63 = vmax.f32 %v220_v48, %v228_v56 }
  0x67   :  { %v226_v57 = vmax.f32 %v210_v39, %v218_v51  ;;  %v231_v60 = vld [vmem:[#allocation2 + $0x4d] sm:$0x1]  ;;  %v232_v0 = vld [vmem:[#allocation2 + $0x5d] sm:$0x1]  ;;  %v237_v4 = vmax.f32 %v221_v49, %v229_v58  ;;  %v238_v5 = vmax.f32 %v222_v50, %v230_v59  ;;  %v243_v10 = vld [vmem:[#allocation2 + $0xe] sm:$0x1] }
  0x68   :  { %v233_v2 = vld [vmem:[#allocation2 + $0x6d] sm:$0x1]  ;;  %v234_v3 = vld [vmem:[#allocation2 + $0x7d] sm:$0x1]  ;;  %v239_v6 = vmax.f32 %v223_v52, %v231_v60  ;;  %v240_v7 = vmax.f32 %v224_v53, %v232_v0  ;;  %v244_v11 = vld [vmem:[#allocation2 + $0x1e] sm:$0x1]  ;;  %v251_v16 = vmax.f32 %v235_v61, %v243_v10 }
  0x69   :  { %v241_v8 = vmax.f32 %v225_v54, %v233_v2  ;;  %v242_v9 = vmax.f32 %v226_v57, %v234_v3  ;;  %v245_v12 = vld [vmem:[#allocation2 + $0x2e] sm:$0x1]  ;;  %v246_v13 = vld [vmem:[#allocation2 + $0x3e] sm:$0x1]  ;;  %v252_v17 = vmax.f32 %v236_v63, %v244_v11  ;;  %v259_v26 = vld [vmem:[#allocation2 + $0xf] sm:$0x1] }
  0x6a   :  { %v247_v14 = vld [vmem:[#allocation2 + $0x4e] sm:$0x1]  ;;  %v248_v15 = vld [vmem:[#allocation2 + $0x5e] sm:$0x1]  ;;  %v253_v19 = vmax.f32 %v237_v4, %v245_v12  ;;  %v254_v22 = vmax.f32 %v238_v5, %v246_v13  ;;  %v260_v29 = vld [vmem:[#allocation2 + $0x1f] sm:$0x1]  ;;  %v267_v35 = vmax.f32 %v251_v16, %v259_v26 }
  0x6b   :  { %v249_v20 = vld [vmem:[#allocation2 + $0x6e] sm:$0x1]  ;;  %v250_v21 = vld [vmem:[#allocation2 + $0x7e] sm:$0x1]  ;;  %v255_v23 = vmax.f32 %v239_v6, %v247_v14  ;;  %v256_v25 = vmax.f32 %v240_v7, %v248_v15  ;;  %v261_v30 = vld [vmem:[#allocation2 + $0x2f] sm:$0x1]  ;;  %v268_v36 = vmax.f32 %v252_v17, %v260_v29 }
  0x6c   :  { %v257_v27 = vmax.f32 %v241_v8, %v249_v20  ;;  %v258_v28 = vmax.f32 %v242_v9, %v250_v21  ;;  %v262_v31 = vld [vmem:[#allocation2 + $0x3f] sm:$0x1]  ;;  %v263_v32 = vld [vmem:[#allocation2 + $0x4f] sm:$0x1]  ;;  %v269_v37 = vmax.f32 %v253_v19, %v261_v30  ;;  %v476_v44 = vld [vmem:[#allocation2 + $0x8] sm:$0x1] }
  0x6d   :  { %v264_v33 = vld [vmem:[#allocation2 + $0x5f] sm:$0x1]  ;;  %v265_v34 = vld [vmem:[#allocation2 + $0x6f] sm:$0x1]  ;;  %v270_v38 = vmax.f32 %v254_v22, %v262_v31  ;;  %v271_v40 = vmax.f32 %v255_v23, %v263_v32  ;;  %v283_v46 = vrot.slane %v268_v36, 7  ;;  %v874_v59 = vsel %vm1100_vm13, %v1158_v62, -inf }
  0x6e   :  { %v266_v39 = vld [vmem:[#allocation2 + $0x7f] sm:$0x1]  ;;  %v272_v41 = vmax.f32 %v256_v25, %v264_v33  ;;  %v273_v42 = vmax.f32 %v257_v27, %v265_v34  ;;  %v286_v47 = vrot.slane %v269_v37, 6  ;;  %v477_v49 = vld [vmem:[#allocation2 + $0x18] sm:$0x1] }
  0x6f   :  { %v274_v45 = vmax.f32 %v258_v28, %v266_v39  ;;  %v289_v48 = vrot.slane %v270_v38, 5  ;;  %v478_v50 = vld [vmem:[#allocation2 + $0x28] sm:$0x1]  ;;  %v292_v51 = vrot.slane %v271_v40, 4  ;;  %v479_v54 = vld [vmem:[#allocation2 + $0x38] sm:$0x1]  ;;  %v285_v55 = vsel %vm284_vm2, %v283_v46, %v267_v35 }
  0x70   :  { %v295_v52 = vrot.slane %v272_v41, 3  ;;  %v298_v53 = vrot.slane %v273_v42, 2  ;;  %v480_v57 = vld [vmem:[#allocation2 + $0x48] sm:$0x1]  ;;  %v481_v58 = vld [vmem:[#allocation2 + $0x58] sm:$0x1]  ;;  %v288_v60 = vsel %vm287_vm5, %v286_v47, %v285_v55 }
  0x71   :  { %v301_v56 = vrot.slane %v274_v45, 1  ;;  %v482_v61 = vld [vmem:[#allocation2 + $0x68] sm:$0x1]  ;;  %v483_v63 = vld [vmem:[#allocation2 + $0x78] sm:$0x1]  ;;  %v291_v2 = vsel %vm290_vm6, %v289_v48, %v288_v60 }
  0x72   :  { %v484_v0 = vld [vmem:[#allocation2 + $0x9] sm:$0x1]  ;;  %v485_v3 = vld [vmem:[#allocation2 + $0x19] sm:$0x1]  ;;  %v294_v7 = vsel %vm293_vm7, %v292_v51, %v291_v2  ;;  %v500_v20 = vld [vmem:[#allocation2 + $0xa] sm:$0x1] }
  0x73   :  { %v486_v4 = vld [vmem:[#allocation2 + $0x29] sm:$0x1]  ;;  %v487_v5 = vld [vmem:[#allocation2 + $0x39] sm:$0x1]  ;;  %v492_v6 = vmax.f32 %v476_v44, %v484_v0  ;;  %v493_v11 = vmax.f32 %v477_v49, %v485_v3  ;;  %v297_v14 = vsel %vm296_vm8, %v295_v52, %v294_v7  ;;  %v501_v21 = vld [vmem:[#allocation2 + $0x1a] sm:$0x1] }
  0x74   :  { %v488_v8 = vld [vmem:[#allocation2 + $0x49] sm:$0x1]  ;;  %v489_v9 = vld [vmem:[#allocation2 + $0x59] sm:$0x1]  ;;  %v494_v12 = vmax.f32 %v478_v50, %v486_v4  ;;  %v495_v13 = vmax.f32 %v479_v54, %v487_v5  ;;  %v300_v22 = vsel %vm299_vm9, %v298_v53, %v297_v14  ;;  %v502_v25 = vld [vmem:[#allocation2 + $0x2a] sm:$0x1] }
  0x75   :  { %v490_v10 = vld [vmem:[#allocation2 + $0x69] sm:$0x1]  ;;  %v491_v15 = vld [vmem:[#allocation2 + $0x79] sm:$0x1]  ;;  %v496_v16 = vmax.f32 %v480_v57, %v488_v8  ;;  %v497_v17 = vmax.f32 %v481_v58, %v489_v9  ;;  %v503_v26 = vld [vmem:[#allocation2 + $0x3a] sm:$0x1]  ;;  %v508_v28 = vmax.f32 %v492_v6, %v500_v20  ;;  %v509_v29 = vmax.f32 %v493_v11, %v501_v21 }
  0x76   :  { %v498_v19 = vmax.f32 %v482_v61, %v490_v10  ;;  %v499_v23 = vmax.f32 %v483_v63, %v491_v15  ;;  %v504_v27 = vld [vmem:[#allocation2 + $0x4a] sm:$0x1]  ;;  %v303_v30 = vsel %vm302_vm10, %v301_v56, %v300_v22  ;;  %v505_v31 = vld [vmem:[#allocation2 + $0x5a] sm:$0x1]  ;;  %v510_v34 = vmax.f32 %v494_v12, %v502_v25  ;;  %v516_v41 = vld [vmem:[#allocation2 + $0xb] sm:$0x1] }
  0x77   :  { %v506_v32 = vld [vmem:[#allocation2 + $0x6a] sm:$0x1]  ;;  %v507_v33 = vld [vmem:[#allocation2 + $0x7a] sm:$0x1]  ;;  %v511_v35 = vmax.f32 %v495_v13, %v503_v26  ;;  %v512_v36 = vmax.f32 %v496_v16, %v504_v27  ;;  %v306_v37 = vsel %vm305_vm11, %v303_v30, -inf  ;;  %v513_v38 = vmax.f32 %v497_v17, %v505_v31 }
  0x78   :  { %v514_v39 = vmax.f32 %v498_v19, %v506_v32  ;;  %v515_v40 = vmax.f32 %v499_v23, %v507_v33  ;;  %v517_v42 = vld [vmem:[#allocation2 + $0x1b] sm:$0x1]  ;;  %307 = vmax.xlane.f32.xlu0 %v306_v37  ;;  %v518_v44 = vld [vmem:[#allocation2 + $0x2b] sm:$0x1]  ;;  %v524_v47 = vmax.f32 %v508_v28, %v516_v41  ;;  %v532_v58 = vld [vmem:[#allocation2 + $0xc] sm:$0x1] }
  0x79   :  { %v519_v45 = vld [vmem:[#allocation2 + $0x3b] sm:$0x1]  ;;  %v520_v46 = vld [vmem:[#allocation2 + $0x4b] sm:$0x1]  ;;  %v525_v48 = vmax.f32 %v509_v29, %v517_v42  ;;  %v526_v52 = vmax.f32 %v510_v34, %v518_v44  ;;  %v533_v60 = vld [vmem:[#allocation2 + $0x1c] sm:$0x1] }
  0x7a   :  { %v521_v49 = vld [vmem:[#allocation2 + $0x5b] sm:$0x1]  ;;  %v522_v50 = vld [vmem:[#allocation2 + $0x6b] sm:$0x1]  ;;  %v527_v53 = vmax.f32 %v511_v35, %v519_v45  ;;  %v528_v54 = vmax.f32 %v512_v36, %v520_v46  ;;  %v534_v61 = vld [vmem:[#allocation2 + $0x2c] sm:$0x1]  ;;  %v540_v3 = vmax.f32 %v524_v47, %v532_v58 }
  0x7b   :  { %v523_v51 = vld [vmem:[#allocation2 + $0x7b] sm:$0x1]  ;;  %v529_v55 = vmax.f32 %v513_v38, %v521_v49  ;;  %v530_v56 = vmax.f32 %v514_v39, %v522_v50  ;;  %v535_v63 = vld [vmem:[#allocation2 + $0x3c] sm:$0x1]  ;;  %v536_v0 = vld [vmem:[#allocation2 + $0x4c] sm:$0x1]  ;;  %v541_v4 = vmax.f32 %v525_v48, %v533_v60  ;;  %v542_v5 = vmax.f32 %v526_v52, %v534_v61 }
  0x7c   :  { %v531_v57 = vmax.f32 %v515_v40, %v523_v51  ;;  %v537_v2 = vld [vmem:[#allocation2 + $0x5c] sm:$0x1]  ;;  %v538_v6 = vld [vmem:[#allocation2 + $0x6c] sm:$0x1]  ;;  %v543_v8 = vmax.f32 %v527_v53, %v535_v63  ;;  %v544_v9 = vmax.f32 %v528_v54, %v536_v0  ;;  %v548_v11 = vld [vmem:[#allocation2 + $0xd] sm:$0x1] }
  0x7d   :  { %v539_v7 = vld [vmem:[#allocation2 + $0x7c] sm:$0x1]  ;;  %v545_v10 = vmax.f32 %v529_v55, %v537_v2  ;;  %v546_v12 = vmax.f32 %v530_v56, %v538_v6  ;;  %v549_v14 = vld [vmem:[#allocation2 + $0x1d] sm:$0x1]  ;;  %v550_v15 = vld [vmem:[#allocation2 + $0x2d] sm:$0x1]  ;;  %v556_v17 = vmax.f32 %v540_v3, %v548_v11 }
  0x7e   :  { %v547_v13 = vmax.f32 %v531_v57, %v539_v7  ;;  %v551_v16 = vld [vmem:[#allocation2 + $0x3d] sm:$0x1]  ;;  %v552_v19 = vld [vmem:[#allocation2 + $0x4d] sm:$0x1]  ;;  %v557_v22 = vmax.f32 %v541_v4, %v549_v14  ;;  %v558_v23 = vmax.f32 %v542_v5, %v550_v15  ;;  %v564_v30 = vld [vmem:[#allocation2 + $0xe] sm:$0x1] }
  0x7f   :  { %v553_v20 = vld [vmem:[#allocation2 + $0x5d] sm:$0x1]  ;;  %v554_v21 = vld [vmem:[#allocation2 + $0x6d] sm:$0x1]  ;;  %v559_v25 = vmax.f32 %v543_v8, %v551_v16  ;;  %v560_v27 = vmax.f32 %v544_v9, %v552_v19  ;;  %v565_v31 = vld [vmem:[#allocation2 + $0x1e] sm:$0x1]  ;;  %v572_v36 = vmax.f32 %v556_v17, %v564_v30 }
  0x80   :  { %v555_v26 = vld [vmem:[#allocation2 + $0x7d] sm:$0x1]  ;;  %v561_v28 = vmax.f32 %v545_v10, %v553_v20  ;;  %v562_v29 = vmax.f32 %v546_v12, %v554_v21  ;;  %v566_v33 = vld [vmem:[#allocation2 + $0x2e] sm:$0x1]  ;;  %v567_v34 = vld [vmem:[#allocation2 + $0x3e] sm:$0x1]  ;;  %v573_v37 = vmax.f32 %v557_v22, %v565_v31 }
  0x81   :  { %v563_v32 = vmax.f32 %v547_v13, %v555_v26  ;;  %v568_v35 = vld [vmem:[#allocation2 + $0x4e] sm:$0x1]  ;;  %v569_v38 = vld [vmem:[#allocation2 + $0x5e] sm:$0x1]  ;;  %v574_v41 = vmax.f32 %v558_v23, %v566_v33  ;;  %v575_v42 = vmax.f32 %v559_v25, %v567_v34  ;;  %v580_v48 = vld [vmem:[#allocation2 + $0xf] sm:$0x1] }
  0x82   :  { %v570_v39 = vld [vmem:[#allocation2 + $0x6e] sm:$0x1]  ;;  %v571_v40 = vld [vmem:[#allocation2 + $0x7e] sm:$0x1]  ;;  %v576_v44 = vmax.f32 %v560_v27, %v568_v35  ;;  %v577_v45 = vmax.f32 %v561_v28, %v569_v38  ;;  %v581_v49 = vld [vmem:[#allocation2 + $0x1f] sm:$0x1]  ;;  %v588_v54 = vmax.f32 %v572_v36, %v580_v48 }
  0x83   :  { %v578_v46 = vmax.f32 %v562_v29, %v570_v39  ;;  %v579_v47 = vmax.f32 %v563_v32, %v571_v40  ;;  %v582_v50 = vld [vmem:[#allocation2 + $0x2f] sm:$0x1]  ;;  %v583_v51 = vld [vmem:[#allocation2 + $0x3f] sm:$0x1]  ;;  %v589_v55 = vmax.f32 %v573_v37, %v581_v49  ;;  %v875_v0 = vsel %vm305_vm11, %v874_v59, -inf }
  0x84   :  { %v584_v52 = vld [vmem:[#allocation2 + $0x4f] sm:$0x1]  ;;  %v585_v53 = vld [vmem:[#allocation2 + $0x5f] sm:$0x1]  ;;  %v590_v56 = vmax.f32 %v574_v41, %v582_v50  ;;  %v591_v60 = vmax.f32 %v575_v42, %v583_v51  ;;  %876 = vmax.xlane.f32.xlu0 %v875_v0  ;;  %v886_v6 = vld [vmem:[#allocation2 + $0xb] sm:$0x1] }
  0x85   :  { %v586_v57 = vld [vmem:[#allocation2 + $0x6f] sm:$0x1]  ;;  %v587_v58 = vld [vmem:[#allocation2 + $0x7f] sm:$0x1]  ;;  %v592_v61 = vmax.f32 %v576_v44, %v584_v52  ;;  %v593_v63 = vmax.f32 %v577_v45, %v585_v53  ;;  %v604_v4 = vrot.slane %v589_v55, 7  ;;  %v880_v10 = vsel %vm1109_vm14, %v1158_v62, -inf }
  0x86   :  { %v594_v2 = vmax.f32 %v578_v46, %v586_v57  ;;  %v595_v3 = vmax.f32 %v579_v47, %v587_v58  ;;  %v606_v5 = vrot.slane %v590_v56, 6  ;;  %v608_v7 = vrot.slane %v591_v60, 5  ;;  %v887_v11 = vld [vmem:[#allocation2 + $0x1b] sm:$0x1]  ;;  %v888_v15 = vld [vmem:[#allocation2 + $0x2b] sm:$0x1] }
  0x87   :  { %v610_v8 = vrot.slane %v592_v61, 4  ;;  %v612_v9 = vrot.slane %v593_v63, 3  ;;  %v605_v12 = vsel %vm284_vm2, %v604_v4, %v588_v54  ;;  %v889_v59 = vld [vmem:[#allocation2 + $0x3b] sm:$0x1]  ;;  %v890_v17 = vld [vmem:[#allocation2 + $0x4b] sm:$0x1] }
  0x88   :  { %v614_v13 = vrot.slane %v594_v2, 2  ;;  %v616_v14 = vrot.slane %v595_v3, 1  ;;  %v607_v16 = vsel %vm287_vm5, %v606_v5, %v605_v12  ;;  %v891_v19 = vld [vmem:[#allocation2 + $0x5b] sm:$0x1]  ;;  %v892_v20 = vld [vmem:[#allocation2 + $0x6b] sm:$0x1] }
  0x89   :  { %v609_v21 = vsel %vm290_vm6, %v608_v7, %v607_v16  ;;  %v893_v22 = vld [vmem:[#allocation2 + $0x7b] sm:$0x1]  ;;  %v894_v23 = vld [vmem:[#allocation2 + $0xc] sm:$0x1]  ;;  %v895_v25 = vld [vmem:[#allocation2 + $0x1c] sm:$0x1] }
  0x8a   :  { %v611_v26 = vsel %vm293_vm7, %v610_v8, %v609_v21  ;;  %v896_v27 = vld [vmem:[#allocation2 + $0x2c] sm:$0x1]  ;;  %v897_v28 = vld [vmem:[#allocation2 + $0x3c] sm:$0x1]  ;;  %v902_v30 = vmax.f32 %v886_v6, %v894_v23  ;;  %v903_v31 = vmax.f32 %v887_v11, %v895_v25  ;;  %v910_v44 = vld [vmem:[#allocation2 + $0xd] sm:$0x1] }
  0x8b   :  { %v898_v29 = vld [vmem:[#allocation2 + $0x4c] sm:$0x1]  ;;  %v613_v32 = vsel %vm296_vm8, %v612_v9, %v611_v26  ;;  %v899_v33 = vld [vmem:[#allocation2 + $0x5c] sm:$0x1]  ;;  %v904_v36 = vmax.f32 %v888_v15, %v896_v27  ;;  %v905_v37 = vmax.f32 %v889_v59, %v897_v28  ;;  %v911_v45 = vld [vmem:[#allocation2 + $0x1d] sm:$0x1] }
  0x8c   :  { %v900_v34 = vld [vmem:[#allocation2 + $0x6c] sm:$0x1]  ;;  %v901_v35 = vld [vmem:[#allocation2 + $0x7c] sm:$0x1]  ;;  %v906_v38 = vmax.f32 %v890_v17, %v898_v29  ;;  %v615_v39 = vsel %vm299_vm9, %v614_v13, %v613_v32  ;;  %v907_v40 = vmax.f32 %v891_v19, %v899_v33  ;;  %v912_v46 = vld [vmem:[#allocation2 + $0x2d] sm:$0x1]  ;;  %v918_v51 = vmax.f32 %v902_v30, %v910_v44 }
  0x8d   :  { %v908_v41 = vmax.f32 %v892_v20, %v900_v34  ;;  %v909_v42 = vmax.f32 %v893_v22, %v901_v35  ;;  %v617_v47 = vsel %vm302_vm10, %v616_v14, %v615_v39  ;;  %v913_v48 = vld [vmem:[#allocation2 + $0x3d] sm:$0x1]  ;;  %v914_v49 = vld [vmem:[#allocation2 + $0x4d] sm:$0x1]  ;;  %v919_v52 = vmax.f32 %v903_v31, %v911_v45  ;;  %v926_v3 = vld [vmem:[#allocation2 + $0xe] sm:$0x1] }
  0x8e   :  { %v915_v50 = vld [vmem:[#allocation2 + $0x5d] sm:$0x1]  ;;  %v920_v53 = vmax.f32 %v904_v36, %v912_v46  ;;  %v619_v54 = vsel %vm432_vm0, %v617_v47, -inf  ;;  %v625_v55 = vsel %vm1135_vm1, %v617_v47, -inf  ;;  %v916_v56 = vld [vmem:[#allocation2 + $0x6d] sm:$0x1]  ;;  %v921_v58 = vmax.f32 %v905_v37, %v913_v48 }
  0x8f   :  { %v917_v57 = vld [vmem:[#allocation2 + $0x7d] sm:$0x1]  ;;  %v922_v60 = vmax.f32 %v906_v38, %v914_v49  ;;  %v620_v61 = vsel %vm305_vm11, %v619_v54, -inf  ;;  %v626_v63 = vsel %vm305_vm11, %v625_v55, -inf  ;;  %v923_v0 = vmax.f32 %v907_v40, %v915_v50  ;;  %v927_v4 = vld [vmem:[#allocation2 + $0x1e] sm:$0x1] }
  0x90   :  { %v924_v2 = vmax.f32 %v908_v41, %v916_v56  ;;  %621 = vmax.xlane.f32.xlu1 %v620_v61  ;;  %627 = vmax.xlane.f32.xlu2 %v626_v63  ;;  %v925_v5 = vmax.f32 %v909_v42, %v917_v57  ;;  %v928_v6 = vld [vmem:[#allocation2 + $0x2e] sm:$0x1]  ;;  %v929_v7 = vld [vmem:[#allocation2 + $0x3e] sm:$0x1]  ;;  %v934_v43 = vmax.f32 %v918_v51, %v926_v3  ;;  %v942_v20 = vld [vmem:[#allocation2 + $0xf] sm:$0x1] }
  0x91   :  { %v930_v8 = vld [vmem:[#allocation2 + $0x4e] sm:$0x1]  ;;  %v935_v9 = vmax.f32 %v919_v52, %v927_v4  ;;  %v931_v11 = vld [vmem:[#allocation2 + $0x5e] sm:$0x1]  ;;  %v936_v14 = vmax.f32 %v920_v53, %v928_v6  ;;  %v937_v15 = vmax.f32 %v921_v58, %v929_v7  ;;  %v943_v21 = vld [vmem:[#allocation2 + $0x1f] sm:$0x1] }
  0x92   :  { %v932_v12 = vld [vmem:[#allocation2 + $0x6e] sm:$0x1]  ;;  %v933_v13 = vld [vmem:[#allocation2 + $0x7e] sm:$0x1]  ;;  %v938_v59 = vmax.f32 %v922_v60, %v930_v8  ;;  %v939_v16 = vmax.f32 %v923_v0, %v931_v11  ;;  %v944_v22 = vld [vmem:[#allocation2 + $0x2f] sm:$0x1]  ;;  %v950_v27 = vmax.f32 %v934_v43, %v942_v20 }
  0x93   :  { %v940_v17 = vmax.f32 %v924_v2, %v932_v12  ;;  %v941_v19 = vmax.f32 %v925_v5, %v933_v13  ;;  %v945_v23 = vld [vmem:[#allocation2 + $0x3f] sm:$0x1]  ;;  %v946_v25 = vld [vmem:[#allocation2 + $0x4f] sm:$0x1]  ;;  %v951_v28 = vmax.f32 %v935_v9, %v943_v21  ;;  %v952_v29 = vmax.f32 %v936_v14, %v944_v22 }
  0x94   :  { %v947_v26 = vld [vmem:[#allocation2 + $0x5f] sm:$0x1]  ;;  %v881_v30 = vsel %vm305_vm11, %v880_v10, -inf  ;;  %v948_v31 = vld [vmem:[#allocation2 + $0x6f] sm:$0x1]  ;;  %v953_v33 = vmax.f32 %v937_v15, %v945_v23  ;;  %v954_v34 = vmax.f32 %v938_v59, %v946_v25 }
  0x95   :  { %v949_v32 = vld [vmem:[#allocation2 + $0x7f] sm:$0x1]  ;;  %v955_v35 = vmax.f32 %v939_v16, %v947_v26  ;;  %v956_v36 = vmax.f32 %v940_v17, %v948_v31  ;;  %v966_v38 = vrot.slane %v951_v28, 7  ;;  %v968_v39 = vrot.slane %v952_v29, 6  ;;  %v744_v57 = vpop.xlane.xlu0 %743  ;;  %v754_v60 = vpop.xlane.xlu1 %753 }
  0x96   :  { %v957_v37 = vmax.f32 %v941_v19, %v949_v32  ;;  %v970_v40 = vrot.slane %v953_v33, 5  ;;  %v972_v41 = vrot.slane %v954_v34, 4  ;;  %v733_v24 = vpop.xlane.xlu2 %732 }
  0x97   :  { %v967_v42 = vsel %vm284_vm2, %v966_v38, %v950_v27  ;;  %v974_v44 = vrot.slane %v955_v35, 3  ;;  %v976_v62 = vrot.slane %v956_v36, 2  ;;  %vm309_vm2 = vcmask 7168  }
  0x98   :  { %882 = vmax.xlane.f32.xlu1 %v881_v30  ;;  %v969_v45 = vsel %vm287_vm5, %v968_v39, %v967_v42  ;;  %v978_v46 = vrot.slane %v957_v37, 1  ;;  %vm623_vm5 = vcmask 31768  }
  0x99   :  { %v971_v10 = vsel %vm290_vm6, %v970_v40, %v969_v45  ;;  %vm629_vm6 = vcmask 39968  }
  0x9a   :  { %v973_v47 = vsel %vm293_vm7, %v972_v41, %v971_v10  ;;  %vm734_vm7 = vcmask 48168  }
  0x9b   :  { %v975_v48 = vsel %vm296_vm8, %v974_v44, %v973_v47  ;;  %vm745_vm8 = vcmask 56368  }
  0x9c   :  { %v977_v49 = vsel %vm299_vm9, %v976_v62, %v975_v48  ;;  %vm755_vm9 = vcmask 64568  }
  0x9d   :  { %v979_v50 = vsel %vm302_vm10, %v978_v46, %v977_v49  ;;  %vm872_vm10 = vcmask 72768  }
  0x9e   :  { %v981_v51 = vsel %vm703_vm12, %v979_v50, -inf  ;;  %v987_v52 = vsel %vm1100_vm13, %v979_v50, -inf  ;;  %v993_v53 = vsel %vm1109_vm14, %v979_v50, -inf  ;;  %vm884_vm12 = vcmask 89168  }
  0x9f   :  { %v982_v54 = vsel %vm305_vm11, %v981_v51, -inf  ;;  %v988_v55 = vsel %vm305_vm11, %v987_v52, -inf  ;;  %v994_v56 = vsel %vm305_vm11, %v993_v53, -inf  ;;  %vm878_vm11 = vcmask 80968  }
  0xa0   :  { %983 = vmax.xlane.f32.xlu2 %v982_v54  ;;  %989 = vmax.xlane.f32.xlu0 %v988_v55  ;;  %vm985_vm13 = vcmask 97368   ;;  %vm991_vm14 = vcmask 105568  }
  0xa1   :  { %995 = vmax.xlane.f32.xlu1 %v994_v56 }
  0xad   :  { %v462_v58 = vpop.xlane.xlu0 %461  ;;  %v473_v18 = vpop.xlane.xlu1 %472 }
  0xbf   :  { %v871_v61 = vpop.xlane.xlu2 %870 }
  0xeb   :  { %v308_v1 = vpop.xlane.xlu0 %307 }
  0xec   :  { %310 = vst.msk [vmem:[#allocation5] sm:$0xff] %vm309_vm2, %v308_v1 }
  0xed   :  { %464 = vst.msk [vmem:[#allocation5] sm:$0xff] %vm463_vm3, %v462_v58 }
  0xee   :  { %475 = vst.msk [vmem:[#allocation5] sm:$0xff] %vm474_vm4, %v473_v18 }
  0xf7   :  { %v877_v2 = vpop.xlane.xlu0 %876 }
 0x103   :  { %v622_v63 = vpop.xlane.xlu1 %621  ;;  %v628_v0 = vpop.xlane.xlu2 %627 }
 0x104   :  { %624 = vst.msk [vmem:[#allocation5] sm:$0xff] %vm623_vm5, %v622_v63 }
 0x105   :  { %630 = vst.msk [vmem:[#allocation5] sm:$0xff] %vm629_vm6, %v628_v0 }
 0x106   :  { %735 = vst.msk [vmem:[#allocation5] sm:$0xff] %vm734_vm7, %v733_v24 }
 0x107   :  { %746 = vst.msk [vmem:[#allocation5] sm:$0xff] %vm745_vm8, %v744_v57 }
 0x108   :  { %756 = vst.msk [vmem:[#allocation5] sm:$0xff] %vm755_vm9, %v754_v60 }
 0x109   :  { %873 = vst.msk [vmem:[#allocation5] sm:$0xff] %vm872_vm10, %v871_v61 }
 0x10a   :  { %879 = vst.msk [vmem:[#allocation5] sm:$0xff] %vm878_vm11, %v877_v2 }
 0x10b   :  { %v883_v3 = vpop.xlane.xlu1 %882 }
 0x10c   :  { %885 = vst.msk [vmem:[#allocation5] sm:$0xff] %vm884_vm12, %v883_v3 }
 0x113   :  { %v984_v4 = vpop.xlane.xlu2 %983  ;;  %v990_v5 = vpop.xlane.xlu0 %989 }
 0x114   :  { %986 = vst.msk [vmem:[#allocation5] sm:$0xff] %vm985_vm13, %v984_v4  ;;  %v996_v6 = vpop.xlane.xlu1 %995 }
 0x115   :  { %992 = vst.msk [vmem:[#allocation5] sm:$0xff] %vm991_vm14, %v990_v5 }
 0x116   :  { %998 = vst.msk [vmem:[#allocation5] sm:$0xff] %vm997_vm15, %v996_v6 }
 0x117   :  { %1009 = dma.vmem_to_hbm [thread:$0]  %s1005_s13, 128, %s1007_s16, [#allocation4]  }
 0x118   :  { %1070 = dma.done.wait [#allocation4], 128  }
 0x119   :  { %1071 = vsyncadd [#allocation4], 4294967168 }
 0x11a   :  { %1014 = vsyncpa [#allocation3], 1 }
 0x11b   :  { %1015 = vsyncpa [#allocation4], 1 }

</bundles_post_ra>
